<compile_context>
chip_gen: v6e
topology: v6e:2x2x1
jax: 0.10.0
libtpu: 0.0.40
codegen_flags: <defaults>
</compile_context>

<pallas_src>
import functools

import jax
import jax.numpy as jnp
import numpy as np
from jax.experimental import pallas as pl
from jax.experimental.pallas import tpu as pltpu


def _round_up(n, m):
    return ((n + m - 1) // m) * m


def _encoder_kernel(eps, input_dim, hidden, hidden_pad,
                    x_ref, w_ref, vec_ref, head_ref, out_ref):
    """One batch tile of the full encoder forward pass.

    x_ref    : (bm, input_dim)                          param_dtype (bf16 or f32)
    w_ref    : (input_dim + 4*hidden_pad, hidden_pad)   rows: W1|W2|W3|W4|W5
    vec_ref  : (15, hidden_pad)  f32                    rows: b1..b5 | g1..g5 | be1..be5
    head_ref : (hidden_pad + 1, out_pad)                rows: [Wmu|Wlogvar]; last = bias
    out_ref  : (bm, out_pad)  f32                       cols: [mu | logvar | zero pad]
    """
    mm_dtype = w_ref.dtype          # matmul-operand dtype (bf16 in production)
    inv_h = 1.0 / hidden            # LN statistics use the TRUE hidden width

    x = x_ref[...].astype(jnp.float32)
    # L2 row-normalization: x * rsqrt(sum(x^2)) -> single EUP op.
    # TODO(synk): no epsilon, matching the PyTorch reference (all-zero row -> NaN).
    ssq = jnp.sum(x * x, axis=-1, keepdims=True)
    x = x * jax.lax.rsqrt(ssq)

    # TODO(synk): F.dropout is identity in eval mode; training-mode dropout would
    # use pltpu.prng_seed + pltpu.prng_random_bits and is intentionally omitted.

    vec = vec_ref[...]              # f32 (15, hidden_pad), single load of the slab

    def lin(v, row_off, rows, idx):
        # Static slice of the weight slab -> free view; low-precision operands,
        # f32 MXU accumulation, f32 bias add.
        w = w_ref[row_off:row_off + rows, :]
        b = vec[idx:idx + 1, :]
        return jnp.dot(v.astype(mm_dtype), w,
                       preferred_element_type=jnp.float32) + b

    def ln(v, idx):
        # Single pass: sum + sum-of-squares; divide by the TRUE hidden width so
        # zero-padded lanes don't perturb the statistics.  gamma/beta are zero in
        # padded lanes, so padded outputs stay exactly zero through every layer.
        g = vec[5 + idx:6 + idx, :]
        be = vec[10 + idx:11 + idx, :]
        s = jnp.sum(v, axis=-1, keepdims=True)
        ss = jnp.sum(v * v, axis=-1, keepdims=True)
        m = s * inv_h
        var = ss * inv_h - m * m
        return (v - m) * jax.lax.rsqrt(var + eps) * g + be

    def sw(v):
        return v * jax.nn.sigmoid(v)

    # Running residual accumulator (res = h1 + ... + h_{i-1}).
    h1 = ln(sw(lin(x, 0, input_dim, 0)), 0)
    res = h1
    h2 = ln(sw(lin(h1, input_dim, hidden_pad, 1) + res), 1)
    res = res + h2
    h3 = ln(sw(lin(h2, input_dim + hidden_pad, hidden_pad, 2) + res), 2)
    res = res + h3
    h4 = ln(sw(lin(h3, input_dim + 2 * hidden_pad, hidden_pad, 3) + res), 3)
    res = res + h4
    h5 = ln(sw(lin(h4, input_dim + 3 * hidden_pad, hidden_pad, 4) + res), 4)

    # Fused mu / logvar head: one matmul, one lane-dense (128-wide) store.
    wh = head_ref[0:hidden_pad, :]
    bh = head_ref[hidden_pad:hidden_pad + 1, :].astype(jnp.float32)
    out = jnp.dot(h5.astype(mm_dtype), wh, preferred_element_type=jnp.float32) + bh
    out_ref[...] = out.astype(out_ref.dtype)


def init_params(key, hidden_dim, latent_dim, input_dim):
    """Deterministic init mirroring nn.Linear default (U[-1/sqrt(fan_in), ...])."""
    params = {}

    def linear(key, fan_in, fan_out):
        kw, kb = jax.random.split(key)
        bound = 1.0 / np.sqrt(fan_in)
        w = jax.random.uniform(kw, (fan_in, fan_out), jnp.float32, -bound, bound)
        b = jax.random.uniform(kb, (1, fan_out), jnp.float32, -bound, bound)
        return w, b

    keys = jax.random.split(key, 7)
    params["fc1"] = linear(keys[0], input_dim, hidden_dim)
    params["fc2"] = linear(keys[1], hidden_dim, hidden_dim)
    params["fc3"] = linear(keys[2], hidden_dim, hidden_dim)
    params["fc4"] = linear(keys[3], hidden_dim, hidden_dim)
    params["fc5"] = linear(keys[4], hidden_dim, hidden_dim)
    params["fc_mu"] = linear(keys[5], hidden_dim, latent_dim)
    params["fc_logvar"] = linear(keys[6], hidden_dim, latent_dim)
    for i in range(1, 6):
        params[f"ln{i}"] = (jnp.ones((1, hidden_dim), jnp.float32),
                            jnp.zeros((1, hidden_dim), jnp.float32))
    return params


def pack_params(params, param_dtype=jnp.bfloat16):
    """Pack 22 parameter tensors into 3 lane-dense slabs (once, outside hot loops).

    Feature dims (hidden, 2*latent) are zero-padded to multiples of 128 lanes;
    padded bias/gamma/beta lanes are zero so padded activations stay exactly zero.
    """
    input_dim, hidden = params["fc1"][0].shape
    latent = params["fc_mu"][0].shape[1]
    hidden_pad = _round_up(hidden, 128)
    out_pad = _round_up(2 * latent, 128)

    def pad2(a, rows, cols):
        return jnp.pad(a, ((0, rows - a.shape[0]), (0, cols - a.shape[1])))

    # (input_dim + 4*hidden_pad, hidden_pad): W1 | W2 | W3 | W4 | W5
    w_slab = jnp.concatenate(
        [pad2(params["fc1"][0], input_dim, hidden_pad)]
        + [pad2(params[f"fc{i}"][0], hidden_pad, hidden_pad) for i in range(2, 6)],
        axis=0).astype(param_dtype)

    # (15, hidden_pad) f32: b1..b5 | gamma1..5 | beta1..5 (padded lanes = 0).
    vec_slab = jnp.concatenate(
        [pad2(params[f"fc{i}"][1], 1, hidden_pad) for i in range(1, 6)]
        + [pad2(params[f"ln{i}"][0], 1, hidden_pad) for i in range(1, 6)]
        + [pad2(params[f"ln{i}"][1], 1, hidden_pad) for i in range(1, 6)],
        axis=0).astype(jnp.float32)

    # (hidden_pad + 1, out_pad): [Wmu | Wlogvar] rows, then fused bias row.
    head_w = jnp.concatenate([params["fc_mu"][0], params["fc_logvar"][0]], axis=1)
    head_b = jnp.concatenate([params["fc_mu"][1], params["fc_logvar"][1]], axis=1)
    head_slab = jnp.concatenate(
        [pad2(head_w, hidden_pad, out_pad), pad2(head_b, 1, out_pad)],
        axis=0).astype(param_dtype)

    return {"w_slab": w_slab, "vec_slab": vec_slab, "head_slab": head_slab,
            "input_dim": input_dim, "hidden": hidden, "latent": latent,
            "hidden_pad": hidden_pad, "out_pad": out_pad}


def encoder_forward(x, packed, dropout_rate=0.0, eps=0.1):
    del dropout_rate  # identity in eval mode (see TODO in the kernel)
    batch, input_dim = x.shape
    assert input_dim == packed["input_dim"]
    hidden, latent = packed["hidden"], packed["latent"]
    hidden_pad, out_pad = packed["hidden_pad"], packed["out_pad"]
    w_slab, vec_slab, head_slab = (packed["w_slab"], packed["vec_slab"],
                                   packed["head_slab"])
    param_dtype = w_slab.dtype

    # Batch tiling: big tiles amortize ~0.35us/step grid overhead, but split into
    # >= 2 steps when possible so "parallel" can shard across both v7x TensorCores.
    bm = min(512, _round_up(batch, 8))
    pb = _round_up(batch, bm)
    if pb // bm < 2:
        bm_half = _round_up(pl.cdiv(pb, 2), 8)
        if bm_half < bm:
            bm = bm_half
            pb = _round_up(batch, bm)
    if pb != batch:
        # Pad with ones (not zeros) so the L2-normalization of padded rows never
        # divides by zero; padded rows are discarded below.
        x = jnp.pad(x, ((0, pb - batch), (0, 0)), constant_values=1.0)
    x = x.astype(param_dtype)   # bf16 x halves HBM traffic for the streamed tiles
    grid = (pb // bm,)

    flops = 2 * pb * (input_dim * hidden_pad + 4 * hidden_pad * hidden_pad
                      + hidden_pad * out_pad)
    transcendentals = pb * (6 * hidden_pad + 6)   # sigmoids + LN rsqrt + L2 rsqrt
    bytes_accessed = (x.size * x.dtype.itemsize + w_slab.nbytes + vec_slab.nbytes
                      + head_slab.nbytes + pb * out_pad * 4)
    cost = pl.CostEstimate(flops=int(flops),
                           transcendentals=int(transcendentals),
                           bytes_accessed=int(bytes_accessed))

    # Explicit VMEM budget: streamed tiles double-buffered, slabs ideally single-
    # buffered (budget 2x in case the fallback path is taken), plus allowance for
    # f32 intermediates.  Floor at the smallest default (16 MiB, v5e), cap at the
    # v7x physical VMEM (64 MiB).
    slab_bytes = w_slab.nbytes + vec_slab.nbytes + head_slab.nbytes
    tile_bytes = (bm * input_dim * jnp.dtype(param_dtype).itemsize
                  + bm * out_pad * 4)
    act_bytes = 24 * bm * max(hidden_pad, input_dim, out_pad) * 4
    vmem_bytes = int(min(64 << 20,
                         max(16 << 20,
                             2 * slab_bytes + 2 * tile_bytes + act_bytes + (4 << 20))))

    kernel = functools.partial(_encoder_kernel, eps, input_dim, hidden, hidden_pad)
    out_shape = jax.ShapeDtypeStruct((pb, out_pad), jnp.float32)
    compiler_params = pltpu.CompilerParams(
        dimension_semantics=("parallel",), vmem_limit_bytes=vmem_bytes)

    def build_call(single_buffer_slabs):
        def resident_spec(shape):
            # Slabs have a constant index_map -> (0,0); double buffering them
            # only wastes VMEM, so request a single buffer when supported.
            if single_buffer_slabs:
                return pl.BlockSpec(shape, lambda i: (0, 0),
                                    pipeline_mode=pl.Buffered(1))
            return pl.BlockSpec(shape, lambda i: (0, 0))

        return pl.pallas_call(
            kernel,
            out_shape=out_shape,
            grid=grid,
            in_specs=[
                pl.BlockSpec((bm, input_dim), lambda i: (i, 0)),  # streamed x tile
                resident_spec(w_slab.shape),                      # resident weights
                resident_spec(vec_slab.shape),                    # resident bias/ln
                resident_spec(head_slab.shape),                   # resident head
            ],
            out_specs=pl.BlockSpec((bm, out_pad), lambda i: (i, 0)),
            compiler_params=compiler_params,
            cost_estimate=cost,
        )

    try:
        out = build_call(True)(x, w_slab, vec_slab, head_slab)
    except Exception:
        # Older jax without BlockSpec pipeline_mode / Buffered(1): default buffering.
        out = build_call(False)(x, w_slab, vec_slab, head_slab)

    out = out[:batch]
    return out[:, :latent], out[:, latent:2 * latent]


def encoder_forward_ref(x, params, eps=0.1):
    """Pure-JAX f32 reference for correctness checking (mirrors the PyTorch module)."""
    x = x / jnp.sqrt(jnp.sum(x * x, axis=-1, keepdims=True))

    def lin(v, p):
        return v @ p[0] + p[1]

    def ln(v, p):
        m = jnp.mean(v, axis=-1, keepdims=True)
        var = jnp.mean((v - m) ** 2, axis=-1, keepdims=True)
        return (v - m) / jnp.sqrt(var + eps) * p[0] + p[1]

    sw = lambda v: v * jax.nn.sigmoid(v)
    h1 = ln(sw(lin(x, params["fc1"])), params["ln1"])
    h2 = ln(sw(lin(h1, params["fc2"]) + h1), params["ln2"])
    h3 = ln(sw(lin(h2, params["fc3"]) + h1 + h2), params["ln3"])
    h4 = ln(sw(lin(h3, params["fc4"]) + h1 + h2 + h3), params["ln4"])
    h5 = ln(sw(lin(h4, params["fc5"]) + h1 + h2 + h3 + h4), params["ln5"])
    return lin(h5, params["fc_mu"]), lin(h5, params["fc_logvar"])


if __name__ == "__main__":
    batch, input_dim, hidden_dim, latent_dim = 8, 64, 32, 16

    key = jax.random.PRNGKey(0)
    kx, kp = jax.random.split(key)
    x = jax.random.normal(kx, (batch, input_dim), jnp.float32)
    params = init_params(kp, hidden_dim, latent_dim, input_dim)

    mu_ref, logvar_ref = encoder_forward_ref(x, params, eps=0.1)

    # 1) f32 parameter slabs: tight structural check (padding / LN-stat math).
    packed_f32 = pack_params(params, param_dtype=jnp.float32)
    mu, logvar = encoder_forward(x, packed_f32, dropout_rate=0.1, eps=0.1)
    jax.block_until_ready((mu, logvar))
    np.testing.assert_allclose(np.asarray(mu), np.asarray(mu_ref), rtol=1e-3, atol=1e-3)
    np.testing.assert_allclose(np.asarray(logvar), np.asarray(logvar_ref), rtol=1e-3, atol=1e-3)

    # 2) bf16 matmul operands (production config): looser gate — only the dot
    #    operands are quantized, so ~1% relative accuracy is expected.
    packed_bf16 = pack_params(params, param_dtype=jnp.bfloat16)
    mu_b, logvar_b = encoder_forward(x, packed_bf16, dropout_rate=0.1, eps=0.1)
    jax.block_until_ready((mu_b, logvar_b))
    np.testing.assert_allclose(np.asarray(mu_b), np.asarray(mu_ref), rtol=1e-1, atol=1e-1)
    np.testing.assert_allclose(np.asarray(logvar_b), np.asarray(logvar_ref), rtol=1e-1, atol=1e-1)

    print("KERNEL_OK")
</pallas_src>

<mosaic_0001>
module attributes {stable_mosaic.version = 11 : i64} {
  func.func @_encoder_kernel(%arg0: i32, %arg1: memref<8x64xf32, #tpu.memory_space<vmem>>, %arg2: memref<576x128xf32, #tpu.memory_space<vmem>>, %arg3: memref<15x128xf32, #tpu.memory_space<vmem>>, %arg4: memref<129x128xf32, #tpu.memory_space<vmem>>, %arg5: memref<8x128xf32, #tpu.memory_space<vmem>>) attributes {dimension_semantics = [#tpu.dimension_semantics<parallel>], iteration_bounds = array<i64: 1>, scalar_prefetch = 0 : i64, scratch_operands = 0 : i64, tpu.core_type = #tpu.core_type<tc>, window_params = [{transform_indices = @transform_0, window_bounds = array<i64: 8, 64>}, {pipeline_mode = #tpu.pipeline_mode<synchronous>, transform_indices = @transform_1, window_bounds = array<i64: 576, 128>}, {pipeline_mode = #tpu.pipeline_mode<synchronous>, transform_indices = @transform_2, window_bounds = array<i64: 15, 128>}, {pipeline_mode = #tpu.pipeline_mode<synchronous>, transform_indices = @transform_3, window_bounds = array<i64: 129, 128>}, {transform_indices = @transform_4, window_bounds = array<i64: 8, 128>}]} {
    %c0 = arith.constant 0 : index
    %c0_0 = arith.constant 0 : index
    %0 = vector.load %arg1[%c0, %c0_0] : memref<8x64xf32, #tpu.memory_space<vmem>>, vector<8x64xf32>
    %1 = arith.mulf %0, %0 : vector<8x64xf32>
    %cst = arith.constant dense<0.000000e+00> : vector<8xf32>
    %2 = vector.multi_reduction <add>, %1, %cst [1] : vector<8x64xf32> to vector<8xf32>
    %3 = vector.shape_cast %2 : vector<8xf32> to vector<8x1xf32>
    %4 = math.rsqrt %3 : vector<8x1xf32>
    %5 = vector.broadcast %4 : vector<8x1xf32> to vector<8x64xf32>
    %6 = arith.mulf %0, %5 : vector<8x64xf32>
    %c0_1 = arith.constant 0 : index
    %c0_2 = arith.constant 0 : index
    %7 = vector.load %arg3[%c0_1, %c0_2] : memref<15x128xf32, #tpu.memory_space<vmem>>, vector<15x128xf32>
    %c0_3 = arith.constant 0 : index
    %c0_4 = arith.constant 0 : index
    %8 = vector.load %arg2[%c0_3, %c0_4] : memref<576x128xf32, #tpu.memory_space<vmem>>, vector<64x128xf32>
    %9 = vector.extract_strided_slice %7 {offsets = [0, 0], sizes = [1, 128], strides = [1, 1]} : vector<15x128xf32> to vector<1x128xf32>
    %cst_5 = arith.constant dense<0.000000e+00> : vector<8x128xf32>
    %10 = tpu.matmul %6, %8, %cst_5 {dimension_numbers = #tpu.dot_dimension_numbers<[1], [0], [0], [1], [0, 0, 1, 1], [], []>} : vector<8x64xf32>, vector<64x128xf32>, vector<8x128xf32> -> vector<8x128xf32>
    %11 = vector.broadcast %9 : vector<1x128xf32> to vector<8x128xf32>
    %12 = arith.addf %10, %11 : vector<8x128xf32>
    %13 = arith.negf %12 : vector<8x128xf32>
    %14 = math.exp %13 : vector<8x128xf32>
    %cst_6 = arith.constant 1.000000e+00 : f32
    %15 = vector.broadcast %cst_6 : f32 to vector<8x128xf32>
    %16 = arith.addf %15, %14 : vector<8x128xf32>
    %17 = arith.divf %15, %16 : vector<8x128xf32>
    %18 = arith.mulf %12, %17 : vector<8x128xf32>
    %19 = vector.extract_strided_slice %7 {offsets = [5, 0], sizes = [1, 128], strides = [1, 1]} : vector<15x128xf32> to vector<1x128xf32>
    %20 = vector.extract_strided_slice %7 {offsets = [10, 0], sizes = [1, 128], strides = [1, 1]} : vector<15x128xf32> to vector<1x128xf32>
    %cst_7 = arith.constant dense<0.000000e+00> : vector<8xf32>
    %21 = vector.multi_reduction <add>, %18, %cst_7 [1] : vector<8x128xf32> to vector<8xf32>
    %22 = vector.shape_cast %21 : vector<8xf32> to vector<8x1xf32>
    %23 = arith.mulf %18, %18 : vector<8x128xf32>
    %cst_8 = arith.constant dense<0.000000e+00> : vector<8xf32>
    %24 = vector.multi_reduction <add>, %23, %cst_8 [1] : vector<8x128xf32> to vector<8xf32>
    %25 = vector.shape_cast %24 : vector<8xf32> to vector<8x1xf32>
    %cst_9 = arith.constant 3.125000e-02 : f32
    %26 = vector.broadcast %cst_9 : f32 to vector<8x1xf32>
    %27 = arith.mulf %22, %26 : vector<8x1xf32>
    %cst_10 = arith.constant 3.125000e-02 : f32
    %28 = vector.broadcast %cst_10 : f32 to vector<8x1xf32>
    %29 = arith.mulf %25, %28 : vector<8x1xf32>
    %30 = arith.mulf %27, %27 : vector<8x1xf32>
    %31 = arith.subf %29, %30 : vector<8x1xf32>
    %32 = vector.broadcast %27 : vector<8x1xf32> to vector<8x128xf32>
    %33 = arith.subf %18, %32 : vector<8x128xf32>
    %cst_11 = arith.constant 1.000000e-01 : f32
    %34 = vector.broadcast %cst_11 : f32 to vector<8x1xf32>
    %35 = arith.addf %31, %34 : vector<8x1xf32>
    %36 = math.rsqrt %35 : vector<8x1xf32>
    %37 = vector.broadcast %36 : vector<8x1xf32> to vector<8x128xf32>
    %38 = arith.mulf %33, %37 : vector<8x128xf32>
    %39 = vector.broadcast %19 : vector<1x128xf32> to vector<8x128xf32>
    %40 = arith.mulf %38, %39 : vector<8x128xf32>
    %41 = vector.broadcast %20 : vector<1x128xf32> to vector<8x128xf32>
    %42 = arith.addf %40, %41 : vector<8x128xf32>
    %c64 = arith.constant 64 : index
    %c0_12 = arith.constant 0 : index
    %43 = vector.load %arg2[%c64, %c0_12] : memref<576x128xf32, #tpu.memory_space<vmem>>, vector<128x128xf32>
    %44 = vector.extract_strided_slice %7 {offsets = [1, 0], sizes = [1, 128], strides = [1, 1]} : vector<15x128xf32> to vector<1x128xf32>
    %cst_13 = arith.constant dense<0.000000e+00> : vector<8x128xf32>
    %45 = tpu.matmul %42, %43, %cst_13 {dimension_numbers = #tpu.dot_dimension_numbers<[1], [0], [0], [1], [0, 0, 1, 1], [], []>} : vector<8x128xf32>, vector<128x128xf32>, vector<8x128xf32> -> vector<8x128xf32>
    %46 = vector.broadcast %44 : vector<1x128xf32> to vector<8x128xf32>
    %47 = arith.addf %45, %46 : vector<8x128xf32>
    %48 = arith.addf %47, %42 : vector<8x128xf32>
    %49 = arith.negf %48 : vector<8x128xf32>
    %50 = math.exp %49 : vector<8x128xf32>
    %cst_14 = arith.constant 1.000000e+00 : f32
    %51 = vector.broadcast %cst_14 : f32 to vector<8x128xf32>
    %52 = arith.addf %51, %50 : vector<8x128xf32>
    %53 = arith.divf %51, %52 : vector<8x128xf32>
    %54 = arith.mulf %48, %53 : vector<8x128xf32>
    %55 = vector.extract_strided_slice %7 {offsets = [6, 0], sizes = [1, 128], strides = [1, 1]} : vector<15x128xf32> to vector<1x128xf32>
    %56 = vector.extract_strided_slice %7 {offsets = [11, 0], sizes = [1, 128], strides = [1, 1]} : vector<15x128xf32> to vector<1x128xf32>
    %cst_15 = arith.constant dense<0.000000e+00> : vector<8xf32>
    %57 = vector.multi_reduction <add>, %54, %cst_15 [1] : vector<8x128xf32> to vector<8xf32>
    %58 = vector.shape_cast %57 : vector<8xf32> to vector<8x1xf32>
    %59 = arith.mulf %54, %54 : vector<8x128xf32>
    %cst_16 = arith.constant dense<0.000000e+00> : vector<8xf32>
    %60 = vector.multi_reduction <add>, %59, %cst_16 [1] : vector<8x128xf32> to vector<8xf32>
    %61 = vector.shape_cast %60 : vector<8xf32> to vector<8x1xf32>
    %cst_17 = arith.constant 3.125000e-02 : f32
    %62 = vector.broadcast %cst_17 : f32 to vector<8x1xf32>
    %63 = arith.mulf %58, %62 : vector<8x1xf32>
    %cst_18 = arith.constant 3.125000e-02 : f32
    %64 = vector.broadcast %cst_18 : f32 to vector<8x1xf32>
    %65 = arith.mulf %61, %64 : vector<8x1xf32>
    %66 = arith.mulf %63, %63 : vector<8x1xf32>
    %67 = arith.subf %65, %66 : vector<8x1xf32>
    %68 = vector.broadcast %63 : vector<8x1xf32> to vector<8x128xf32>
    %69 = arith.subf %54, %68 : vector<8x128xf32>
    %cst_19 = arith.constant 1.000000e-01 : f32
    %70 = vector.broadcast %cst_19 : f32 to vector<8x1xf32>
    %71 = arith.addf %67, %70 : vector<8x1xf32>
    %72 = math.rsqrt %71 : vector<8x1xf32>
    %73 = vector.broadcast %72 : vector<8x1xf32> to vector<8x128xf32>
    %74 = arith.mulf %69, %73 : vector<8x128xf32>
    %75 = vector.broadcast %55 : vector<1x128xf32> to vector<8x128xf32>
    %76 = arith.mulf %74, %75 : vector<8x128xf32>
    %77 = vector.broadcast %56 : vector<1x128xf32> to vector<8x128xf32>
    %78 = arith.addf %76, %77 : vector<8x128xf32>
    %79 = arith.addf %42, %78 : vector<8x128xf32>
    %c192 = arith.constant 192 : index
    %c0_20 = arith.constant 0 : index
    %80 = vector.load %arg2[%c192, %c0_20] : memref<576x128xf32, #tpu.memory_space<vmem>>, vector<128x128xf32>
    %81 = vector.extract_strided_slice %7 {offsets = [2, 0], sizes = [1, 128], strides = [1, 1]} : vector<15x128xf32> to vector<1x128xf32>
    %cst_21 = arith.constant dense<0.000000e+00> : vector<8x128xf32>
    %82 = tpu.matmul %78, %80, %cst_21 {dimension_numbers = #tpu.dot_dimension_numbers<[1], [0], [0], [1], [0, 0, 1, 1], [], []>} : vector<8x128xf32>, vector<128x128xf32>, vector<8x128xf32> -> vector<8x128xf32>
    %83 = vector.broadcast %81 : vector<1x128xf32> to vector<8x128xf32>
    %84 = arith.addf %82, %83 : vector<8x128xf32>
    %85 = arith.addf %84, %79 : vector<8x128xf32>
    %86 = arith.negf %85 : vector<8x128xf32>
    %87 = math.exp %86 : vector<8x128xf32>
    %cst_22 = arith.constant 1.000000e+00 : f32
    %88 = vector.broadcast %cst_22 : f32 to vector<8x128xf32>
    %89 = arith.addf %88, %87 : vector<8x128xf32>
    %90 = arith.divf %88, %89 : vector<8x128xf32>
    %91 = arith.mulf %85, %90 : vector<8x128xf32>
    %92 = vector.extract_strided_slice %7 {offsets = [7, 0], sizes = [1, 128], strides = [1, 1]} : vector<15x128xf32> to vector<1x128xf32>
    %93 = vector.extract_strided_slice %7 {offsets = [12, 0], sizes = [1, 128], strides = [1, 1]} : vector<15x128xf32> to vector<1x128xf32>
    %cst_23 = arith.constant dense<0.000000e+00> : vector<8xf32>
    %94 = vector.multi_reduction <add>, %91, %cst_23 [1] : vector<8x128xf32> to vector<8xf32>
    %95 = vector.shape_cast %94 : vector<8xf32> to vector<8x1xf32>
    %96 = arith.mulf %91, %91 : vector<8x128xf32>
    %cst_24 = arith.constant dense<0.000000e+00> : vector<8xf32>
    %97 = vector.multi_reduction <add>, %96, %cst_24 [1] : vector<8x128xf32> to vector<8xf32>
    %98 = vector.shape_cast %97 : vector<8xf32> to vector<8x1xf32>
    %cst_25 = arith.constant 3.125000e-02 : f32
    %99 = vector.broadcast %cst_25 : f32 to vector<8x1xf32>
    %100 = arith.mulf %95, %99 : vector<8x1xf32>
    %cst_26 = arith.constant 3.125000e-02 : f32
    %101 = vector.broadcast %cst_26 : f32 to vector<8x1xf32>
    %102 = arith.mulf %98, %101 : vector<8x1xf32>
    %103 = arith.mulf %100, %100 : vector<8x1xf32>
    %104 = arith.subf %102, %103 : vector<8x1xf32>
    %105 = vector.broadcast %100 : vector<8x1xf32> to vector<8x128xf32>
    %106 = arith.subf %91, %105 : vector<8x128xf32>
    %cst_27 = arith.constant 1.000000e-01 : f32
    %107 = vector.broadcast %cst_27 : f32 to vector<8x1xf32>
    %108 = arith.addf %104, %107 : vector<8x1xf32>
    %109 = math.rsqrt %108 : vector<8x1xf32>
    %110 = vector.broadcast %109 : vector<8x1xf32> to vector<8x128xf32>
    %111 = arith.mulf %106, %110 : vector<8x128xf32>
    %112 = vector.broadcast %92 : vector<1x128xf32> to vector<8x128xf32>
    %113 = arith.mulf %111, %112 : vector<8x128xf32>
    %114 = vector.broadcast %93 : vector<1x128xf32> to vector<8x128xf32>
    %115 = arith.addf %113, %114 : vector<8x128xf32>
    %116 = arith.addf %79, %115 : vector<8x128xf32>
    %c320 = arith.constant 320 : index
    %c0_28 = arith.constant 0 : index
    %117 = vector.load %arg2[%c320, %c0_28] : memref<576x128xf32, #tpu.memory_space<vmem>>, vector<128x128xf32>
    %118 = vector.extract_strided_slice %7 {offsets = [3, 0], sizes = [1, 128], strides = [1, 1]} : vector<15x128xf32> to vector<1x128xf32>
    %cst_29 = arith.constant dense<0.000000e+00> : vector<8x128xf32>
    %119 = tpu.matmul %115, %117, %cst_29 {dimension_numbers = #tpu.dot_dimension_numbers<[1], [0], [0], [1], [0, 0, 1, 1], [], []>} : vector<8x128xf32>, vector<128x128xf32>, vector<8x128xf32> -> vector<8x128xf32>
    %120 = vector.broadcast %118 : vector<1x128xf32> to vector<8x128xf32>
    %121 = arith.addf %119, %120 : vector<8x128xf32>
    %122 = arith.addf %121, %116 : vector<8x128xf32>
    %123 = arith.negf %122 : vector<8x128xf32>
    %124 = math.exp %123 : vector<8x128xf32>
    %cst_30 = arith.constant 1.000000e+00 : f32
    %125 = vector.broadcast %cst_30 : f32 to vector<8x128xf32>
    %126 = arith.addf %125, %124 : vector<8x128xf32>
    %127 = arith.divf %125, %126 : vector<8x128xf32>
    %128 = arith.mulf %122, %127 : vector<8x128xf32>
    %129 = vector.extract_strided_slice %7 {offsets = [8, 0], sizes = [1, 128], strides = [1, 1]} : vector<15x128xf32> to vector<1x128xf32>
    %130 = vector.extract_strided_slice %7 {offsets = [13, 0], sizes = [1, 128], strides = [1, 1]} : vector<15x128xf32> to vector<1x128xf32>
    %cst_31 = arith.constant dense<0.000000e+00> : vector<8xf32>
    %131 = vector.multi_reduction <add>, %128, %cst_31 [1] : vector<8x128xf32> to vector<8xf32>
    %132 = vector.shape_cast %131 : vector<8xf32> to vector<8x1xf32>
    %133 = arith.mulf %128, %128 : vector<8x128xf32>
    %cst_32 = arith.constant dense<0.000000e+00> : vector<8xf32>
    %134 = vector.multi_reduction <add>, %133, %cst_32 [1] : vector<8x128xf32> to vector<8xf32>
    %135 = vector.shape_cast %134 : vector<8xf32> to vector<8x1xf32>
    %cst_33 = arith.constant 3.125000e-02 : f32
    %136 = vector.broadcast %cst_33 : f32 to vector<8x1xf32>
    %137 = arith.mulf %132, %136 : vector<8x1xf32>
    %cst_34 = arith.constant 3.125000e-02 : f32
    %138 = vector.broadcast %cst_34 : f32 to vector<8x1xf32>
    %139 = arith.mulf %135, %138 : vector<8x1xf32>
    %140 = arith.mulf %137, %137 : vector<8x1xf32>
    %141 = arith.subf %139, %140 : vector<8x1xf32>
    %142 = vector.broadcast %137 : vector<8x1xf32> to vector<8x128xf32>
    %143 = arith.subf %128, %142 : vector<8x128xf32>
    %cst_35 = arith.constant 1.000000e-01 : f32
    %144 = vector.broadcast %cst_35 : f32 to vector<8x1xf32>
    %145 = arith.addf %141, %144 : vector<8x1xf32>
    %146 = math.rsqrt %145 : vector<8x1xf32>
    %147 = vector.broadcast %146 : vector<8x1xf32> to vector<8x128xf32>
    %148 = arith.mulf %143, %147 : vector<8x128xf32>
    %149 = vector.broadcast %129 : vector<1x128xf32> to vector<8x128xf32>
    %150 = arith.mulf %148, %149 : vector<8x128xf32>
    %151 = vector.broadcast %130 : vector<1x128xf32> to vector<8x128xf32>
    %152 = arith.addf %150, %151 : vector<8x128xf32>
    %153 = arith.addf %116, %152 : vector<8x128xf32>
    %c448 = arith.constant 448 : index
    %c0_36 = arith.constant 0 : index
    %154 = vector.load %arg2[%c448, %c0_36] : memref<576x128xf32, #tpu.memory_space<vmem>>, vector<128x128xf32>
    %155 = vector.extract_strided_slice %7 {offsets = [4, 0], sizes = [1, 128], strides = [1, 1]} : vector<15x128xf32> to vector<1x128xf32>
    %cst_37 = arith.constant dense<0.000000e+00> : vector<8x128xf32>
    %156 = tpu.matmul %152, %154, %cst_37 {dimension_numbers = #tpu.dot_dimension_numbers<[1], [0], [0], [1], [0, 0, 1, 1], [], []>} : vector<8x128xf32>, vector<128x128xf32>, vector<8x128xf32> -> vector<8x128xf32>
    %157 = vector.broadcast %155 : vector<1x128xf32> to vector<8x128xf32>
    %158 = arith.addf %156, %157 : vector<8x128xf32>
    %159 = arith.addf %158, %153 : vector<8x128xf32>
    %160 = arith.negf %159 : vector<8x128xf32>
    %161 = math.exp %160 : vector<8x128xf32>
    %cst_38 = arith.constant 1.000000e+00 : f32
    %162 = vector.broadcast %cst_38 : f32 to vector<8x128xf32>
    %163 = arith.addf %162, %161 : vector<8x128xf32>
    %164 = arith.divf %162, %163 : vector<8x128xf32>
    %165 = arith.mulf %159, %164 : vector<8x128xf32>
    %166 = vector.extract_strided_slice %7 {offsets = [9, 0], sizes = [1, 128], strides = [1, 1]} : vector<15x128xf32> to vector<1x128xf32>
    %167 = vector.extract_strided_slice %7 {offsets = [14, 0], sizes = [1, 128], strides = [1, 1]} : vector<15x128xf32> to vector<1x128xf32>
    %cst_39 = arith.constant dense<0.000000e+00> : vector<8xf32>
    %168 = vector.multi_reduction <add>, %165, %cst_39 [1] : vector<8x128xf32> to vector<8xf32>
    %169 = vector.shape_cast %168 : vector<8xf32> to vector<8x1xf32>
    %170 = arith.mulf %165, %165 : vector<8x128xf32>
    %cst_40 = arith.constant dense<0.000000e+00> : vector<8xf32>
    %171 = vector.multi_reduction <add>, %170, %cst_40 [1] : vector<8x128xf32> to vector<8xf32>
    %172 = vector.shape_cast %171 : vector<8xf32> to vector<8x1xf32>
    %cst_41 = arith.constant 3.125000e-02 : f32
    %173 = vector.broadcast %cst_41 : f32 to vector<8x1xf32>
    %174 = arith.mulf %169, %173 : vector<8x1xf32>
    %cst_42 = arith.constant 3.125000e-02 : f32
    %175 = vector.broadcast %cst_42 : f32 to vector<8x1xf32>
    %176 = arith.mulf %172, %175 : vector<8x1xf32>
    %177 = arith.mulf %174, %174 : vector<8x1xf32>
    %178 = arith.subf %176, %177 : vector<8x1xf32>
    %179 = vector.broadcast %174 : vector<8x1xf32> to vector<8x128xf32>
    %180 = arith.subf %165, %179 : vector<8x128xf32>
    %cst_43 = arith.constant 1.000000e-01 : f32
    %181 = vector.broadcast %cst_43 : f32 to vector<8x1xf32>
    %182 = arith.addf %178, %181 : vector<8x1xf32>
    %183 = math.rsqrt %182 : vector<8x1xf32>
    %184 = vector.broadcast %183 : vector<8x1xf32> to vector<8x128xf32>
    %185 = arith.mulf %180, %184 : vector<8x128xf32>
    %186 = vector.broadcast %166 : vector<1x128xf32> to vector<8x128xf32>
    %187 = arith.mulf %185, %186 : vector<8x128xf32>
    %188 = vector.broadcast %167 : vector<1x128xf32> to vector<8x128xf32>
    %189 = arith.addf %187, %188 : vector<8x128xf32>
    %c0_44 = arith.constant 0 : index
    %c0_45 = arith.constant 0 : index
    %190 = vector.load %arg4[%c0_44, %c0_45] : memref<129x128xf32, #tpu.memory_space<vmem>>, vector<128x128xf32>
    %c128 = arith.constant 128 : index
    %c0_46 = arith.constant 0 : index
    %191 = vector.load %arg4[%c128, %c0_46] : memref<129x128xf32, #tpu.memory_space<vmem>>, vector<1x128xf32>
    %cst_47 = arith.constant dense<0.000000e+00> : vector<8x128xf32>
    %192 = tpu.matmul %189, %190, %cst_47 {dimension_numbers = #tpu.dot_dimension_numbers<[1], [0], [0], [1], [0, 0, 1, 1], [], []>} : vector<8x128xf32>, vector<128x128xf32>, vector<8x128xf32> -> vector<8x128xf32>
    %193 = vector.broadcast %191 : vector<1x128xf32> to vector<8x128xf32>
    %194 = arith.addf %192, %193 : vector<8x128xf32>
    %c0_48 = arith.constant 0 : index
    %c0_49 = arith.constant 0 : index
    %195 = vector.load %arg5[%c0_48, %c0_49] : memref<8x128xf32, #tpu.memory_space<vmem>>, vector<8x128xf32>
    tpu.vector_store %arg5[%c0_48, %c0_49], %194 {strides = array<i32>} : memref<8x128xf32, #tpu.memory_space<vmem>>, vector<8x128xf32>,
    return
  }
  func.func @transform_0(%arg0: i32) -> (i32, i32) {
    %c0_i32 = arith.constant 0 : i32
    %c0_i32_0 = arith.constant 0 : i32
    return %arg0, %c0_i32 : i32, i32
  }
  func.func @transform_1(%arg0: i32) -> (i32, i32) {
    %c0_i32 = arith.constant 0 : i32
    %c0_i32_0 = arith.constant 0 : i32
    %c0_i32_1 = arith.constant 0 : i32
    return %c0_i32, %c0_i32_0 : i32, i32
  }
  func.func @transform_2(%arg0: i32) -> (i32, i32) {
    %c0_i32 = arith.constant 0 : i32
    %c0_i32_0 = arith.constant 0 : i32
    %c0_i32_1 = arith.constant 0 : i32
    return %c0_i32, %c0_i32_0 : i32, i32
  }
  func.func @transform_3(%arg0: i32) -> (i32, i32) {
    %c0_i32 = arith.constant 0 : i32
    %c0_i32_0 = arith.constant 0 : i32
    %c0_i32_1 = arith.constant 0 : i32
    return %c0_i32, %c0_i32_0 : i32, i32
  }
  func.func @transform_4(%arg0: i32) -> (i32, i32) {
    %c0_i32 = arith.constant 0 : i32
    %c0_i32_0 = arith.constant 0 : i32
    return %arg0, %c0_i32 : i32, i32
  }
}

module attributes {stable_mosaic.version = 11 : i64} {
  func.func @_encoder_kernel(%arg0: i32, %arg1: memref<8x64xf32, #tpu.memory_space<vmem>>, %arg2: memref<576x128xf32, #tpu.memory_space<vmem>>, %arg3: memref<15x128xf32, #tpu.memory_space<vmem>>, %arg4: memref<129x128xf32, #tpu.memory_space<vmem>>, %arg5: memref<8x128xf32, #tpu.memory_space<vmem>>) attributes {dimension_semantics = [#tpu.dimension_semantics<parallel>], iteration_bounds = array<i64: 1>, scalar_prefetch = 0 : i64, scratch_operands = 0 : i64, tpu.core_type = #tpu.core_type<tc>, window_params = [{transform_indices = @transform_0, window_bounds = array<i64: 8, 64>}, {pipeline_mode = #tpu.pipeline_mode<synchronous>, transform_indices = @transform_1, window_bounds = array<i64: 576, 128>}, {pipeline_mode = #tpu.pipeline_mode<synchronous>, transform_indices = @transform_2, window_bounds = array<i64: 15, 128>}, {pipeline_mode = #tpu.pipeline_mode<synchronous>, transform_indices = @transform_3, window_bounds = array<i64: 129, 128>}, {transform_indices = @transform_4, window_bounds = array<i64: 8, 128>}]} {
    %c0 = arith.constant 0 : index
    %c0_0 = arith.constant 0 : index
    %0 = vector.load %arg1[%c0, %c0_0] : memref<8x64xf32, #tpu.memory_space<vmem>>, vector<8x64xf32>
    %1 = arith.mulf %0, %0 : vector<8x64xf32>
    %cst = arith.constant dense<0.000000e+00> : vector<8xf32>
    %2 = vector.multi_reduction <add>, %1, %cst [1] : vector<8x64xf32> to vector<8xf32>
    %3 = vector.shape_cast %2 : vector<8xf32> to vector<8x1xf32>
    %4 = math.rsqrt %3 : vector<8x1xf32>
    %5 = vector.broadcast %4 : vector<8x1xf32> to vector<8x64xf32>
    %6 = arith.mulf %0, %5 : vector<8x64xf32>
    %c0_1 = arith.constant 0 : index
    %c0_2 = arith.constant 0 : index
    %7 = vector.load %arg3[%c0_1, %c0_2] : memref<15x128xf32, #tpu.memory_space<vmem>>, vector<15x128xf32>
    %c0_3 = arith.constant 0 : index
    %c0_4 = arith.constant 0 : index
    %8 = vector.load %arg2[%c0_3, %c0_4] : memref<576x128xf32, #tpu.memory_space<vmem>>, vector<64x128xf32>
    %9 = vector.extract_strided_slice %7 {offsets = [0, 0], sizes = [1, 128], strides = [1, 1]} : vector<15x128xf32> to vector<1x128xf32>
    %cst_5 = arith.constant dense<0.000000e+00> : vector<8x128xf32>
    %10 = tpu.matmul %6, %8, %cst_5 {dimension_numbers = #tpu.dot_dimension_numbers<[1], [0], [0], [1], [0, 0, 1, 1], [], []>} : vector<8x64xf32>, vector<64x128xf32>, vector<8x128xf32> -> vector<8x128xf32>
    %11 = vector.broadcast %9 : vector<1x128xf32> to vector<8x128xf32>
    %12 = arith.addf %10, %11 : vector<8x128xf32>
    %13 = arith.negf %12 : vector<8x128xf32>
    %14 = math.exp %13 : vector<8x128xf32>
    %cst_6 = arith.constant 1.000000e+00 : f32
    %15 = vector.broadcast %cst_6 : f32 to vector<8x128xf32>
    %16 = arith.addf %15, %14 : vector<8x128xf32>
    %17 = arith.divf %15, %16 : vector<8x128xf32>
    %18 = arith.mulf %12, %17 : vector<8x128xf32>
    %19 = vector.extract_strided_slice %7 {offsets = [5, 0], sizes = [1, 128], strides = [1, 1]} : vector<15x128xf32> to vector<1x128xf32>
    %20 = vector.extract_strided_slice %7 {offsets = [10, 0], sizes = [1, 128], strides = [1, 1]} : vector<15x128xf32> to vector<1x128xf32>
    %cst_7 = arith.constant dense<0.000000e+00> : vector<8xf32>
    %21 = vector.multi_reduction <add>, %18, %cst_7 [1] : vector<8x128xf32> to vector<8xf32>
    %22 = vector.shape_cast %21 : vector<8xf32> to vector<8x1xf32>
    %23 = arith.mulf %18, %18 : vector<8x128xf32>
    %cst_8 = arith.constant dense<0.000000e+00> : vector<8xf32>
    %24 = vector.multi_reduction <add>, %23, %cst_8 [1] : vector<8x128xf32> to vector<8xf32>
    %25 = vector.shape_cast %24 : vector<8xf32> to vector<8x1xf32>
    %cst_9 = arith.constant 3.125000e-02 : f32
    %26 = vector.broadcast %cst_9 : f32 to vector<8x1xf32>
    %27 = arith.mulf %22, %26 : vector<8x1xf32>
    %cst_10 = arith.constant 3.125000e-02 : f32
    %28 = vector.broadcast %cst_10 : f32 to vector<8x1xf32>
    %29 = arith.mulf %25, %28 : vector<8x1xf32>
    %30 = arith.mulf %27, %27 : vector<8x1xf32>
    %31 = arith.subf %29, %30 : vector<8x1xf32>
    %32 = vector.broadcast %27 : vector<8x1xf32> to vector<8x128xf32>
    %33 = arith.subf %18, %32 : vector<8x128xf32>
    %cst_11 = arith.constant 1.000000e-01 : f32
    %34 = vector.broadcast %cst_11 : f32 to vector<8x1xf32>
    %35 = arith.addf %31, %34 : vector<8x1xf32>
    %36 = math.rsqrt %35 : vector<8x1xf32>
    %37 = vector.broadcast %36 : vector<8x1xf32> to vector<8x128xf32>
    %38 = arith.mulf %33, %37 : vector<8x128xf32>
    %39 = vector.broadcast %19 : vector<1x128xf32> to vector<8x128xf32>
    %40 = arith.mulf %38, %39 : vector<8x128xf32>
    %41 = vector.broadcast %20 : vector<1x128xf32> to vector<8x128xf32>
    %42 = arith.addf %40, %41 : vector<8x128xf32>
    %c64 = arith.constant 64 : index
    %c0_12 = arith.constant 0 : index
    %43 = vector.load %arg2[%c64, %c0_12] : memref<576x128xf32, #tpu.memory_space<vmem>>, vector<128x128xf32>
    %44 = vector.extract_strided_slice %7 {offsets = [1, 0], sizes = [1, 128], strides = [1, 1]} : vector<15x128xf32> to vector<1x128xf32>
    %cst_13 = arith.constant dense<0.000000e+00> : vector<8x128xf32>
    %45 = tpu.matmul %42, %43, %cst_13 {dimension_numbers = #tpu.dot_dimension_numbers<[1], [0], [0], [1], [0, 0, 1, 1], [], []>} : vector<8x128xf32>, vector<128x128xf32>, vector<8x128xf32> -> vector<8x128xf32>
    %46 = vector.broadcast %44 : vector<1x128xf32> to vector<8x128xf32>
    %47 = arith.addf %45, %46 : vector<8x128xf32>
    %48 = arith.addf %47, %42 : vector<8x128xf32>
    %49 = arith.negf %48 : vector<8x128xf32>
    %50 = math.exp %49 : vector<8x128xf32>
    %cst_14 = arith.constant 1.000000e+00 : f32
    %51 = vector.broadcast %cst_14 : f32 to vector<8x128xf32>
    %52 = arith.addf %51, %50 : vector<8x128xf32>
    %53 = arith.divf %51, %52 : vector<8x128xf32>
    %54 = arith.mulf %48, %53 : vector<8x128xf32>
    %55 = vector.extract_strided_slice %7 {offsets = [6, 0], sizes = [1, 128], strides = [1, 1]} : vector<15x128xf32> to vector<1x128xf32>
    %56 = vector.extract_strided_slice %7 {offsets = [11, 0], sizes = [1, 128], strides = [1, 1]} : vector<15x128xf32> to vector<1x128xf32>
    %cst_15 = arith.constant dense<0.000000e+00> : vector<8xf32>
    %57 = vector.multi_reduction <add>, %54, %cst_15 [1] : vector<8x128xf32> to vector<8xf32>
    %58 = vector.shape_cast %57 : vector<8xf32> to vector<8x1xf32>
    %59 = arith.mulf %54, %54 : vector<8x128xf32>
    %cst_16 = arith.constant dense<0.000000e+00> : vector<8xf32>
    %60 = vector.multi_reduction <add>, %59, %cst_16 [1] : vector<8x128xf32> to vector<8xf32>
    %61 = vector.shape_cast %60 : vector<8xf32> to vector<8x1xf32>
    %cst_17 = arith.constant 3.125000e-02 : f32
    %62 = vector.broadcast %cst_17 : f32 to vector<8x1xf32>
    %63 = arith.mulf %58, %62 : vector<8x1xf32>
    %cst_18 = arith.constant 3.125000e-02 : f32
    %64 = vector.broadcast %cst_18 : f32 to vector<8x1xf32>
    %65 = arith.mulf %61, %64 : vector<8x1xf32>
    %66 = arith.mulf %63, %63 : vector<8x1xf32>
    %67 = arith.subf %65, %66 : vector<8x1xf32>
    %68 = vector.broadcast %63 : vector<8x1xf32> to vector<8x128xf32>
    %69 = arith.subf %54, %68 : vector<8x128xf32>
    %cst_19 = arith.constant 1.000000e-01 : f32
    %70 = vector.broadcast %cst_19 : f32 to vector<8x1xf32>
    %71 = arith.addf %67, %70 : vector<8x1xf32>
    %72 = math.rsqrt %71 : vector<8x1xf32>
    %73 = vector.broadcast %72 : vector<8x1xf32> to vector<8x128xf32>
    %74 = arith.mulf %69, %73 : vector<8x128xf32>
    %75 = vector.broadcast %55 : vector<1x128xf32> to vector<8x128xf32>
    %76 = arith.mulf %74, %75 : vector<8x128xf32>
    %77 = vector.broadcast %56 : vector<1x128xf32> to vector<8x128xf32>
    %78 = arith.addf %76, %77 : vector<8x128xf32>
    %79 = arith.addf %42, %78 : vector<8x128xf32>
    %c192 = arith.constant 192 : index
    %c0_20 = arith.constant 0 : index
    %80 = vector.load %arg2[%c192, %c0_20] : memref<576x128xf32, #tpu.memory_space<vmem>>, vector<128x128xf32>
    %81 = vector.extract_strided_slice %7 {offsets = [2, 0], sizes = [1, 128], strides = [1, 1]} : vector<15x128xf32> to vector<1x128xf32>
    %cst_21 = arith.constant dense<0.000000e+00> : vector<8x128xf32>
    %82 = tpu.matmul %78, %80, %cst_21 {dimension_numbers = #tpu.dot_dimension_numbers<[1], [0], [0], [1], [0, 0, 1, 1], [], []>} : vector<8x128xf32>, vector<128x128xf32>, vector<8x128xf32> -> vector<8x128xf32>
    %83 = vector.broadcast %81 : vector<1x128xf32> to vector<8x128xf32>
    %84 = arith.addf %82, %83 : vector<8x128xf32>
    %85 = arith.addf %84, %79 : vector<8x128xf32>
    %86 = arith.negf %85 : vector<8x128xf32>
    %87 = math.exp %86 : vector<8x128xf32>
    %cst_22 = arith.constant 1.000000e+00 : f32
    %88 = vector.broadcast %cst_22 : f32 to vector<8x128xf32>
    %89 = arith.addf %88, %87 : vector<8x128xf32>
    %90 = arith.divf %88, %89 : vector<8x128xf32>
    %91 = arith.mulf %85, %90 : vector<8x128xf32>
    %92 = vector.extract_strided_slice %7 {offsets = [7, 0], sizes = [1, 128], strides = [1, 1]} : vector<15x128xf32> to vector<1x128xf32>
    %93 = vector.extract_strided_slice %7 {offsets = [12, 0], sizes = [1, 128], strides = [1, 1]} : vector<15x128xf32> to vector<1x128xf32>
    %cst_23 = arith.constant dense<0.000000e+00> : vector<8xf32>
    %94 = vector.multi_reduction <add>, %91, %cst_23 [1] : vector<8x128xf32> to vector<8xf32>
    %95 = vector.shape_cast %94 : vector<8xf32> to vector<8x1xf32>
    %96 = arith.mulf %91, %91 : vector<8x128xf32>
    %cst_24 = arith.constant dense<0.000000e+00> : vector<8xf32>
    %97 = vector.multi_reduction <add>, %96, %cst_24 [1] : vector<8x128xf32> to vector<8xf32>
    %98 = vector.shape_cast %97 : vector<8xf32> to vector<8x1xf32>
    %cst_25 = arith.constant 3.125000e-02 : f32
    %99 = vector.broadcast %cst_25 : f32 to vector<8x1xf32>
    %100 = arith.mulf %95, %99 : vector<8x1xf32>
    %cst_26 = arith.constant 3.125000e-02 : f32
    %101 = vector.broadcast %cst_26 : f32 to vector<8x1xf32>
    %102 = arith.mulf %98, %101 : vector<8x1xf32>
    %103 = arith.mulf %100, %100 : vector<8x1xf32>
    %104 = arith.subf %102, %103 : vector<8x1xf32>
    %105 = vector.broadcast %100 : vector<8x1xf32> to vector<8x128xf32>
    %106 = arith.subf %91, %105 : vector<8x128xf32>
    %cst_27 = arith.constant 1.000000e-01 : f32
    %107 = vector.broadcast %cst_27 : f32 to vector<8x1xf32>
    %108 = arith.addf %104, %107 : vector<8x1xf32>
    %109 = math.rsqrt %108 : vector<8x1xf32>
    %110 = vector.broadcast %109 : vector<8x1xf32> to vector<8x128xf32>
    %111 = arith.mulf %106, %110 : vector<8x128xf32>
    %112 = vector.broadcast %92 : vector<1x128xf32> to vector<8x128xf32>
    %113 = arith.mulf %111, %112 : vector<8x128xf32>
    %114 = vector.broadcast %93 : vector<1x128xf32> to vector<8x128xf32>
    %115 = arith.addf %113, %114 : vector<8x128xf32>
    %116 = arith.addf %79, %115 : vector<8x128xf32>
    %c320 = arith.constant 320 : index
    %c0_28 = arith.constant 0 : index
    %117 = vector.load %arg2[%c320, %c0_28] : memref<576x128xf32, #tpu.memory_space<vmem>>, vector<128x128xf32>
    %118 = vector.extract_strided_slice %7 {offsets = [3, 0], sizes = [1, 128], strides = [1, 1]} : vector<15x128xf32> to vector<1x128xf32>
    %cst_29 = arith.constant dense<0.000000e+00> : vector<8x128xf32>
    %119 = tpu.matmul %115, %117, %cst_29 {dimension_numbers = #tpu.dot_dimension_numbers<[1], [0], [0], [1], [0, 0, 1, 1], [], []>} : vector<8x128xf32>, vector<128x128xf32>, vector<8x128xf32> -> vector<8x128xf32>
    %120 = vector.broadcast %118 : vector<1x128xf32> to vector<8x128xf32>
    %121 = arith.addf %119, %120 : vector<8x128xf32>
    %122 = arith.addf %121, %116 : vector<8x128xf32>
    %123 = arith.negf %122 : vector<8x128xf32>
    %124 = math.exp %123 : vector<8x128xf32>
    %cst_30 = arith.constant 1.000000e+00 : f32
    %125 = vector.broadcast %cst_30 : f32 to vector<8x128xf32>
    %126 = arith.addf %125, %124 : vector<8x128xf32>
    %127 = arith.divf %125, %126 : vector<8x128xf32>
    %128 = arith.mulf %122, %127 : vector<8x128xf32>
    %129 = vector.extract_strided_slice %7 {offsets = [8, 0], sizes = [1, 128], strides = [1, 1]} : vector<15x128xf32> to vector<1x128xf32>
    %130 = vector.extract_strided_slice %7 {offsets = [13, 0], sizes = [1, 128], strides = [1, 1]} : vector<15x128xf32> to vector<1x128xf32>
    %cst_31 = arith.constant dense<0.000000e+00> : vector<8xf32>
    %131 = vector.multi_reduction <add>, %128, %cst_31 [1] : vector<8x128xf32> to vector<8xf32>
    %132 = vector.shape_cast %131 : vector<8xf32> to vector<8x1xf32>
    %133 = arith.mulf %128, %128 : vector<8x128xf32>
    %cst_32 = arith.constant dense<0.000000e+00> : vector<8xf32>
    %134 = vector.multi_reduction <add>, %133, %cst_32 [1] : vector<8x128xf32> to vector<8xf32>
    %135 = vector.shape_cast %134 : vector<8xf32> to vector<8x1xf32>
    %cst_33 = arith.constant 3.125000e-02 : f32
    %136 = vector.broadcast %cst_33 : f32 to vector<8x1xf32>
    %137 = arith.mulf %132, %136 : vector<8x1xf32>
    %cst_34 = arith.constant 3.125000e-02 : f32
    %138 = vector.broadcast %cst_34 : f32 to vector<8x1xf32>
    %139 = arith.mulf %135, %138 : vector<8x1xf32>
    %140 = arith.mulf %137, %137 : vector<8x1xf32>
    %141 = arith.subf %139, %140 : vector<8x1xf32>
    %142 = vector.broadcast %137 : vector<8x1xf32> to vector<8x128xf32>
    %143 = arith.subf %128, %142 : vector<8x128xf32>
    %cst_35 = arith.constant 1.000000e-01 : f32
    %144 = vector.broadcast %cst_35 : f32 to vector<8x1xf32>
    %145 = arith.addf %141, %144 : vector<8x1xf32>
    %146 = math.rsqrt %145 : vector<8x1xf32>
    %147 = vector.broadcast %146 : vector<8x1xf32> to vector<8x128xf32>
    %148 = arith.mulf %143, %147 : vector<8x128xf32>
    %149 = vector.broadcast %129 : vector<1x128xf32> to vector<8x128xf32>
    %150 = arith.mulf %148, %149 : vector<8x128xf32>
    %151 = vector.broadcast %130 : vector<1x128xf32> to vector<8x128xf32>
    %152 = arith.addf %150, %151 : vector<8x128xf32>
    %153 = arith.addf %116, %152 : vector<8x128xf32>
    %c448 = arith.constant 448 : index
    %c0_36 = arith.constant 0 : index
    %154 = vector.load %arg2[%c448, %c0_36] : memref<576x128xf32, #tpu.memory_space<vmem>>, vector<128x128xf32>
    %155 = vector.extract_strided_slice %7 {offsets = [4, 0], sizes = [1, 128], strides = [1, 1]} : vector<15x128xf32> to vector<1x128xf32>
    %cst_37 = arith.constant dense<0.000000e+00> : vector<8x128xf32>
    %156 = tpu.matmul %152, %154, %cst_37 {dimension_numbers = #tpu.dot_dimension_numbers<[1], [0], [0], [1], [0, 0, 1, 1], [], []>} : vector<8x128xf32>, vector<128x128xf32>, vector<8x128xf32> -> vector<8x128xf32>
    %157 = vector.broadcast %155 : vector<1x128xf32> to vector<8x128xf32>
    %158 = arith.addf %156, %157 : vector<8x128xf32>
    %159 = arith.addf %158, %153 : vector<8x128xf32>
    %160 = arith.negf %159 : vector<8x128xf32>
    %161 = math.exp %160 : vector<8x128xf32>
    %cst_38 = arith.constant 1.000000e+00 : f32
    %162 = vector.broadcast %cst_38 : f32 to vector<8x128xf32>
    %163 = arith.addf %162, %161 : vector<8x128xf32>
    %164 = arith.divf %162, %163 : vector<8x128xf32>
    %165 = arith.mulf %159, %164 : vector<8x128xf32>
    %166 = vector.extract_strided_slice %7 {offsets = [9, 0], sizes = [1, 128], strides = [1, 1]} : vector<15x128xf32> to vector<1x128xf32>
    %167 = vector.extract_strided_slice %7 {offsets = [14, 0], sizes = [1, 128], strides = [1, 1]} : vector<15x128xf32> to vector<1x128xf32>
    %cst_39 = arith.constant dense<0.000000e+00> : vector<8xf32>
    %168 = vector.multi_reduction <add>, %165, %cst_39 [1] : vector<8x128xf32> to vector<8xf32>
    %169 = vector.shape_cast %168 : vector<8xf32> to vector<8x1xf32>
    %170 = arith.mulf %165, %165 : vector<8x128xf32>
    %cst_40 = arith.constant dense<0.000000e+00> : vector<8xf32>
    %171 = vector.multi_reduction <add>, %170, %cst_40 [1] : vector<8x128xf32> to vector<8xf32>
    %172 = vector.shape_cast %171 : vector<8xf32> to vector<8x1xf32>
    %cst_41 = arith.constant 3.125000e-02 : f32
    %173 = vector.broadcast %cst_41 : f32 to vector<8x1xf32>
    %174 = arith.mulf %169, %173 : vector<8x1xf32>
    %cst_42 = arith.constant 3.125000e-02 : f32
    %175 = vector.broadcast %cst_42 : f32 to vector<8x1xf32>
    %176 = arith.mulf %172, %175 : vector<8x1xf32>
    %177 = arith.mulf %174, %174 : vector<8x1xf32>
    %178 = arith.subf %176, %177 : vector<8x1xf32>
    %179 = vector.broadcast %174 : vector<8x1xf32> to vector<8x128xf32>
    %180 = arith.subf %165, %179 : vector<8x128xf32>
    %cst_43 = arith.constant 1.000000e-01 : f32
    %181 = vector.broadcast %cst_43 : f32 to vector<8x1xf32>
    %182 = arith.addf %178, %181 : vector<8x1xf32>
    %183 = math.rsqrt %182 : vector<8x1xf32>
    %184 = vector.broadcast %183 : vector<8x1xf32> to vector<8x128xf32>
    %185 = arith.mulf %180, %184 : vector<8x128xf32>
    %186 = vector.broadcast %166 : vector<1x128xf32> to vector<8x128xf32>
    %187 = arith.mulf %185, %186 : vector<8x128xf32>
    %188 = vector.broadcast %167 : vector<1x128xf32> to vector<8x128xf32>
    %189 = arith.addf %187, %188 : vector<8x128xf32>
    %c0_44 = arith.constant 0 : index
    %c0_45 = arith.constant 0 : index
    %190 = vector.load %arg4[%c0_44, %c0_45] : memref<129x128xf32, #tpu.memory_space<vmem>>, vector<128x128xf32>
    %c128 = arith.constant 128 : index
    %c0_46 = arith.constant 0 : index
    %191 = vector.load %arg4[%c128, %c0_46] : memref<129x128xf32, #tpu.memory_space<vmem>>, vector<1x128xf32>
    %cst_47 = arith.constant dense<0.000000e+00> : vector<8x128xf32>
    %192 = tpu.matmul %189, %190, %cst_47 {dimension_numbers = #tpu.dot_dimension_numbers<[1], [0], [0], [1], [0, 0, 1, 1], [], []>} : vector<8x128xf32>, vector<128x128xf32>, vector<8x128xf32> -> vector<8x128xf32>
    %193 = vector.broadcast %191 : vector<1x128xf32> to vector<8x128xf32>
    %194 = arith.addf %192, %193 : vector<8x128xf32>
    %c0_48 = arith.constant 0 : index
    %c0_49 = arith.constant 0 : index
    %195 = vector.load %arg5[%c0_48, %c0_49] : memref<8x128xf32, #tpu.memory_space<vmem>>, vector<8x128xf32>
    tpu.vector_store %arg5[%c0_48, %c0_49], %194 {strides = array<i32>} : memref<8x128xf32, #tpu.memory_space<vmem>>, vector<8x128xf32>,
    return
  }
  func.func @transform_0(%arg0: i32) -> (i32, i32) {
    %c0_i32 = arith.constant 0 : i32
    %c0_i32_0 = arith.constant 0 : i32
    return %arg0, %c0_i32 : i32, i32
  }
  func.func @transform_1(%arg0: i32) -> (i32, i32) {
    %c0_i32 = arith.constant 0 : i32
    %c0_i32_0 = arith.constant 0 : i32
    %c0_i32_1 = arith.constant 0 : i32
    return %c0_i32, %c0_i32_0 : i32, i32
  }
  func.func @transform_2(%arg0: i32) -> (i32, i32) {
    %c0_i32 = arith.constant 0 : i32
    %c0_i32_0 = arith.constant 0 : i32
    %c0_i32_1 = arith.constant 0 : i32
    return %c0_i32, %c0_i32_0 : i32, i32
  }
  func.func @transform_3(%arg0: i32) -> (i32, i32) {
    %c0_i32 = arith.constant 0 : i32
    %c0_i32_0 = arith.constant 0 : i32
    %c0_i32_1 = arith.constant 0 : i32
    return %c0_i32, %c0_i32_0 : i32, i32
  }
  func.func @transform_4(%arg0: i32) -> (i32, i32) {
    %c0_i32 = arith.constant 0 : i32
    %c0_i32_0 = arith.constant 0 : i32
    return %arg0, %c0_i32 : i32, i32
  }
}

</mosaic_0001>

<bundles_post_ra>
// kernel: tpu_custom_call.1
= control target key start
LH: loop header
LB: loop body
LE: loop exit
PB: predicated region body
PF: predicated region fallthrough
CT: control target
= control target key end

     0   :  { %9 = vsyncpa [#allocation3], 0  ;;  %s1466_s0 = inlined_call_operand.hbm [shape: f32[8,64], index: 0, kind: input, shape index: {}]   ;;  %s1467_s1 = inlined_call_operand.hbm [shape: f32[576,128], index: 1, kind: input, shape index: {}]   ;;  %s1468_s2 = inlined_call_operand.hbm [shape: f32[15,128], index: 2, kind: input, shape index: {}]   ;;  %s1469_s3 = inlined_call_operand.hbm [shape: f32[129,128], index: 3, kind: input, shape index: {}]   ;;  %s1470_s4 = inlined_call_operand.hbm [shape: f32[8,128], index: 4, kind: output, shape index: {}]  }
   0x1   :  { %10 = vsyncpa [#allocation6], 0 }
   0x2   :  { %11 = vsyncpa [#allocation9], 0 }
   0x3   :  { %12 = vsyncpa [#allocation4], 0  ;;  %s1236_s15 = smov [#allocation5]  }
   0x4   :  { %s28_s16 = sshll.u32 %s1236_s15, 4  ;;  %s29_s16 = int_to_ptr.vmem [resolvable:$true] %s28_s16 }
   0x5   :  { %s1136_s17 = scalar_lea.vmem %s29_s16, 9216  ;;  %p1141_p1 = scmp.lt.s32.totalorder %s29_s16, %s29_s16 }
   0x6   :  { %p1137_p0 = scmp.ne.s32.totalorder %s29_s16, %s1136_s17  ;;  %p1142_p2 = scmp.lt.s32.totalorder %s1136_s17, %s1136_s17 }
   0x8   :  { %p1143_p3 = por %p1142_p2, %p1141_p1 }
   0xa   :  { %p1144_p4 = pnand %p1143_p3, %p1137_p0 }
   0xc   :  { %1147 = shalt.err (!%p1144_p4)
}
   0xd   :  { %s1237_s18 = smov 128   ;;  %s1238_s19 = smov 8  }
   0xe   :  { %34 = dma.hbm_to_vmem [thread:$0]  %s1467_s1, 9216, %s29_s16, [#allocation6], %s1237_s18, %s1237_s18, %s1238_s19  }
   0xf   :  { %s1239_s22 = smov [#allocation2]   ;;  %s1240_s24 = smov [#allocation7]  }
  0x10   :  { %s19_s23 = sshll.u32 %s1239_s22, 4  ;;  %s40_s25 = sshll.u32 %s1240_s24, 4  ;;  %s20_s23 = int_to_ptr.vmem [resolvable:$true] %s19_s23  ;;  %s41_s25 = int_to_ptr.vmem [resolvable:$true] %s40_s25 }
  0x11   :  { %s1156_s26 = scalar_lea.vmem %s20_s23, 128  ;;  %p1161_p6 = scmp.lt.s32.totalorder %s20_s23, %s20_s23 }
  0x12   :  { %p1157_p5 = scmp.ne.s32.totalorder %s20_s23, %s1156_s26  ;;  %p1162_p7 = scmp.lt.s32.totalorder %s1156_s26, %s1156_s26 }
  0x14   :  { %p1163_p8 = por %p1162_p7, %p1161_p6 }
  0x16   :  { %p1164_p9 = pnand %p1163_p8, %p1157_p5 }
  0x18   :  { %1167 = shalt.err (!%p1164_p9)
}
  0x19   :  { %22 = dma.hbm_to_vmem [thread:$0]  %s1466_s0, 128, %s20_s23, [#allocation3]  }
  0x1a   :  { %s1176_s29 = scalar_lea.vmem %s41_s25, 256  ;;  %p1181_p11 = scmp.lt.s32.totalorder %s41_s25, %s41_s25 }
  0x1b   :  { %p1177_p10 = scmp.ne.s32.totalorder %s41_s25, %s1176_s29  ;;  %p1182_p12 = scmp.lt.s32.totalorder %s1176_s29, %s1176_s29 }
  0x1d   :  { %p1183_p13 = por %p1182_p12, %p1181_p11 }
  0x1f   :  { %p1184_p0 = pnand %p1183_p13, %p1177_p10 }
  0x21   :  { %1187 = shalt.err (!%p1184_p0)
}
  0x22   :  { %46 = dma.hbm_to_vmem [thread:$0]  %s1468_s2, 256, %s41_s25, [#allocation6], %s1237_s18, %s1237_s18, %s1238_s19  }
  0x23   :  { %s1241_s5 = smov [#allocation8]  }
  0x24   :  { %s52_s6 = sshll.u32 %s1241_s5, 4  ;;  %s53_s6 = int_to_ptr.vmem [resolvable:$true] %s52_s6 }
  0x25   :  { %s1196_s7 = scalar_lea.vmem %s53_s6, 2176  ;;  %p1201_p2 = scmp.lt.s32.totalorder %s53_s6, %s53_s6 }
  0x26   :  { %p1197_p1 = scmp.ne.s32.totalorder %s53_s6, %s1196_s7  ;;  %p1202_p3 = scmp.lt.s32.totalorder %s1196_s7, %s1196_s7 }
  0x28   :  { %p1203_p4 = por %p1202_p3, %p1201_p2 }
  0x2a   :  { %p1204_p5 = pnand %p1203_p4, %p1197_p1 }
  0x2c   :  { %1207 = shalt.err (!%p1204_p5)
}
  0x2d   :  { %58 = dma.hbm_to_vmem [thread:$0]  %s1469_s3, 2176, %s53_s6, [#allocation9], %s1237_s18, %s1237_s18, %s1238_s19  }
  0x2e   :  { %1228 = dma.done.wait [#allocation3], 128  }
  0x2f   :  { %1229 = vsyncadd [#allocation3], 4294967168 }
  0x30   :  { %1230 = dma.done.wait [#allocation6], 9472  }
  0x31   :  { %1231 = vsyncadd [#allocation6], 4294957824 }
  0x32   :  { %1232 = dma.done.wait [#allocation9], 2176  }
  0x33   :  { %1233 = vsyncadd [#allocation9], 4294965120  ;;  %v71_v0 = vld [vmem:[#allocation2] sm:$0xff]  ;;  %vm73_vm0 = vcmask 523264   ;;  %v1242_v3 = vmov 0.0   ;;  %v87_v5 = vld [vmem:[#allocation5 + $0x30] sm:$0xff]  ;;  %v89_v17 = vlaneseq }
  0x34   :  { %v72_v1 = vmul.f32 %v71_v0, %v71_v0  ;;  %893 = vmatprep.subr.mxu0 %v1242_v3  ;;  %v88_v4 = vld [vmem:[#allocation5 + $0x38] sm:$0xff]  ;;  %912 = vmatprep.subr.mxu1 %v1242_v3  ;;  %vm1243_vm1 = vmmov 0   ;;  %v86_v6 = vld [vmem:[#allocation5 + $0x28] sm:$0xff]  ;;  %v85_v7 = vld [vmem:[#allocation5 + $0x20] sm:$0xff]  ;;  %s1244_s2 = smov [#allocation10]  }
  0x35   :  { %894 = vmatpush3.msra.mxu0 %v88_v4  ;;  %909 = vmatprep.mubr.msk.f32.mxu0 %vm1243_vm1, %v1242_v3  ;;  %v84_v8 = vld [vmem:[#allocation5 + $0x18] sm:$0xff]  ;;  %v83_v9 = vld [vmem:[#allocation5 + $0x10] sm:$0xff]  ;;  %v82_v10 = vld [vmem:[#allocation5 + $0x8] sm:$0xff]  ;;  %v1311_v18 = vshrl.u32 %v89_v17, 7  ;;  %s781_s3 = sshll.u32 %s1244_s2, 4  ;;  %s782_s3 = int_to_ptr.vmem [resolvable:$true] %s781_s3 }
  0x36   :  { %v74_v2 = vsel %vm73_vm0, %v72_v1, 0.0  ;;  %895 = vmatprep.subr.mxu0 %v1242_v3  ;;  %944 = vmatprep.mubr.msk.f32.mxu1 %vm1243_vm1, %v1242_v3  ;;  %v81_v11 = vld [vmem:[#allocation5] sm:$0xff]  ;;  %v211_v15 = vld [vmem:[#allocation5 + $0xb8] sm:$0xff]  ;;  %v210_v16 = vld [vmem:[#allocation5 + $0xb0] sm:$0xff]  ;;  %s1208_s9 = scalar_lea.vmem %s782_s3, 128  ;;  %p1213_p7 = scmp.lt.s32.totalorder %s782_s3, %s782_s3 }
  0x37   :  { %75 = vadd.xlane.f32.xlu0 %v74_v2  ;;  %896 = vmatpush3.msra.mxu0 %v87_v5  ;;  %v91_v19 = vsub.s32 0, %v1311_v18  ;;  %v1314_v20 = vld [vmem:[#allocation7] sm:$0xff]  ;;  %v209_v31 = vld [vmem:[#allocation5 + $0xa8] sm:$0xff]  ;;  %v207_v33 = vld [vmem:[#allocation5 + $0x98] sm:$0xff]  ;;  %v188_v52 = vsub.s32 5, %v1311_v18  ;;  %v193_v53 = vsub.s32 2, %v1311_v18  ;;  %p1209_p6 = scmp.ne.s32.totalorder %s782_s3, %s1208_s9  ;;  %p1214_p8 = scmp.lt.s32.totalorder %s1208_s9, %s1208_s9 }
  0x38   :  { %897 = vmatprep.subr.mxu0 %v1242_v3  ;;  %913 = vmatpush3.msra.mxu1 %v211_v15  ;;  %v208_v32 = vld [vmem:[#allocation5 + $0xa0] sm:$0xff]  ;;  %v206_v34 = vld [vmem:[#allocation5 + $0x90] sm:$0xff]  ;;  %v205_v35 = vld [vmem:[#allocation5 + $0x88] sm:$0xff] }
  0x39   :  { %898 = vmatpush3.msra.mxu0 %v86_v6  ;;  %914 = vmatprep.subr.mxu1 %v1242_v3  ;;  %v92_v21 = vrot.slane %v1314_v20, %v91_v19  ;;  %v204_v36 = vld [vmem:[#allocation5 + $0x80] sm:$0xff]  ;;  %v203_v37 = vld [vmem:[#allocation5 + $0x78] sm:$0xff]  ;;  %v202_v38 = vld [vmem:[#allocation5 + $0x70] sm:$0xff]  ;;  %v189_v56 = vrot.slane %v1314_v20, %v188_v52  ;;  %p1215_p9 = por %p1214_p8, %p1213_p7 }
  0x3a   :  { %899 = vmatprep.subr.mxu0 %v1242_v3  ;;  %915 = vmatpush3.msra.mxu1 %v210_v16  ;;  %v201_v39 = vld [vmem:[#allocation5 + $0x68] sm:$0xff]  ;;  %v200_v40 = vld [vmem:[#allocation5 + $0x60] sm:$0xff]  ;;  %v199_v41 = vld [vmem:[#allocation5 + $0x58] sm:$0xff] }
  0x3b   :  { %900 = vmatpush3.msra.mxu0 %v85_v7  ;;  %916 = vmatprep.subr.mxu1 %v1242_v3  ;;  %v198_v42 = vld [vmem:[#allocation5 + $0x50] sm:$0xff]  ;;  %v197_v43 = vld [vmem:[#allocation5 + $0x48] sm:$0xff]  ;;  %v196_v44 = vld [vmem:[#allocation5 + $0x40] sm:$0xff]  ;;  %p1216_p10 = pnand %p1215_p9, %p1209_p6 }
  0x3c   :  { %901 = vmatprep.subr.mxu0 %v1242_v3  ;;  %917 = vmatpush3.msra.mxu1 %v209_v31  ;;  %v1335_v54 = vld [vmem:[#allocation7 + $0x8] sm:$0x7f]  ;;  %v333_v62 = vld [vmem:[#allocation5 + $0x138] sm:$0xff]  ;;  %v332_v63 = vld [vmem:[#allocation5 + $0x130] sm:$0xff] }
  0x3d   :  { %902 = vmatpush3.msra.mxu0 %v84_v8  ;;  %918 = vmatprep.subr.mxu1 %v1242_v3  ;;  %v194_v59 = vrot.slane %v1335_v54, %v193_v53  ;;  %v329_v15 = vld [vmem:[#allocation5 + $0x118] sm:$0xff]  ;;  %v328_v16 = vld [vmem:[#allocation5 + $0x110] sm:$0xff]  ;;  %v327_v17 = vld [vmem:[#allocation5 + $0x108] sm:$0xff] }
  0x3e   :  { %903 = vmatprep.subr.mxu0 %v1242_v3  ;;  %919 = vmatpush3.msra.mxu1 %v208_v32 }
  0x3f   :  { %904 = vmatpush3.msra.mxu0 %v83_v9  ;;  %920 = vmatprep.subr.mxu1 %v1242_v3 }
  0x40   :  { %905 = vmatprep.subr.mxu0 %v1242_v3  ;;  %921 = vmatpush3.msra.mxu1 %v207_v33 }
  0x41   :  { %906 = vmatpush3.msra.mxu0 %v82_v10  ;;  %922 = vmatprep.subr.mxu1 %v1242_v3 }
  0x42   :  { %907 = vmatprep.subr.mxu0 %v1242_v3  ;;  %923 = vmatpush3.msra.mxu1 %v206_v34 }
  0x43   :  { %908 = vmatpush3.msra.mxu0 %v81_v11  ;;  %924 = vmatprep.subr.mxu1 %v1242_v3 }
  0x44   :  { %947 = vmatprep.subr.mxu0 %v1242_v3  ;;  %925 = vmatpush3.msra.mxu1 %v205_v35 }
  0x45   :  { %926 = vmatprep.subr.mxu1 %v1242_v3 }
  0x46   :  { %927 = vmatpush3.msra.mxu1 %v204_v36 }
  0x47   :  { %928 = vmatprep.subr.mxu1 %v1242_v3 }
  0x48   :  { %929 = vmatpush3.msra.mxu1 %v203_v37  ;;  %v309_v37 = vsub.s32 6, %v1311_v18 }
  0x49   :  { %930 = vmatprep.subr.mxu1 %v1242_v3 }
  0x4a   :  { %931 = vmatpush3.msra.mxu1 %v202_v38  ;;  %v314_v38 = vsub.s32 3, %v1311_v18 }
  0x4b   :  { %932 = vmatprep.subr.mxu1 %v1242_v3 }
  0x4c   :  { %933 = vmatpush3.msra.mxu1 %v201_v39 }
  0x4d   :  { %934 = vmatprep.subr.mxu1 %v1242_v3 }
  0x4e   :  { %935 = vmatpush3.msra.mxu1 %v200_v40  ;;  %v310_v40 = vrot.slane %v1314_v20, %v309_v37 }
  0x4f   :  { %936 = vmatprep.subr.mxu1 %v1242_v3 }
  0x50   :  { %937 = vmatpush3.msra.mxu1 %v199_v41 }
  0x51   :  { %938 = vmatprep.subr.mxu1 %v1242_v3 }
  0x52   :  { %939 = vmatpush3.msra.mxu1 %v198_v42 }
  0x53   :  { %940 = vmatprep.subr.mxu1 %v1242_v3 }
  0x54   :  { %941 = vmatpush3.msra.mxu1 %v197_v43  ;;  %v315_v43 = vrot.slane %v1335_v54, %v314_v38 }
  0x55   :  { %942 = vmatprep.subr.mxu1 %v1242_v3 }
  0x56   :  { %943 = vmatpush3.msra.mxu1 %v196_v44 }
  0x57   :  { %982 = vmatprep.subr.mxu1 %v1242_v3 }
  0xc0   :  { %v76_v12 = vpop.xlane.xlu0 %75 }
  0xc1   :  { %1096 = vrsqrt.f32 %v76_v12 }
  0xce   :  { %v1097_v13 = vpop.eup %1096 }
  0xcf   :  { %v78_v14 = vmul.f32 %v1097_v13, %v71_v0  ;;  %v214_v0 = vsub.s32 1, %v1311_v18  ;;  %v331_v13 = vld [vmem:[#allocation5 + $0x128] sm:$0xff] }
  0xd1   :  { %910 = vmatmul.mubr.msk.f32.vlgmr.msra.gmra.mxu0 %vm73_vm0, %v78_v14  ;;  %v215_v1 = vrot.slane %v1314_v20, %v214_v0  ;;  %v330_v14 = vld [vmem:[#allocation5 + $0x120] sm:$0xff] }
  0xd2   :  { %979 = vmatprep.mubr.msk.f32.mxu0 %vm1243_vm1, %v1242_v3  ;;  %948 = vmatpush3.msra.mxu0 %v333_v62 }
  0xd3   :  { %949 = vmatprep.subr.mxu0 %v1242_v3 }
  0xd4   :  { %950 = vmatpush3.msra.mxu0 %v332_v63 }
  0xd5   :  { %951 = vmatprep.subr.mxu0 %v1242_v3 }
  0xd6   :  { %952 = vmatpush3.msra.mxu0 %v331_v13  ;;  %v440_v13 = vld [vmem:[#allocation5 + $0x140] sm:$0xff] }
  0xd7   :  { %953 = vmatprep.subr.mxu0 %v1242_v3 }
  0xd8   :  { %954 = vmatpush3.msra.mxu0 %v330_v14 }
  0xd9   :  { %955 = vmatprep.subr.mxu0 %v1242_v3 }
  0xda   :  { %956 = vmatpush3.msra.mxu0 %v329_v15 }
  0xdb   :  { %957 = vmatprep.subr.mxu0 %v1242_v3 }
  0xdc   :  { %958 = vmatpush3.msra.mxu0 %v328_v16 }
  0xdd   :  { %959 = vmatprep.subr.mxu0 %v1242_v3 }
  0xde   :  { %960 = vmatpush3.msra.mxu0 %v327_v17 }
  0xdf   :  { %961 = vmatprep.subr.mxu0 %v1242_v3 }
 0x191   :  { %v162_v22 = vpop.f32.mrf.mxu0 }
 0x192   :  { %v163_v23 = vadd.f32 %v162_v22, %v92_v21  ;;  %v326_v21 = vld [vmem:[#allocation5 + $0x100] sm:$0xff]  ;;  %v325_v22 = vld [vmem:[#allocation5 + $0xf8] sm:$0xff] }
 0x193   :  { %v911_v24 = vpop.f32.mrf.mxu0  ;;  %962 = vmatpush3.msra.mxu0 %v326_v21 }
 0x194   :  { %v793_v25 = vmul.f32 -1.442695, %v163_v23  ;;  %963 = vmatprep.subr.mxu0 %v1242_v3  ;;  %v323_v24 = vld [vmem:[#allocation5 + $0xe8] sm:$0xff] }
 0x195   :  { %964 = vmatpush3.msra.mxu0 %v325_v22 }
 0x196   :  { %1098 = vpow2.f32 %v793_v25  ;;  %965 = vmatprep.subr.mxu0 %v1242_v3  ;;  %v322_v25 = vld [vmem:[#allocation5 + $0xe0] sm:$0xff] }
 0x1a3   :  { %v1099_v26 = vpop.eup %1098 }
 0x1a4   :  { %v169_v27 = vadd.f32 1.0, %v1099_v26  ;;  %v321_v26 = vld [vmem:[#allocation5 + $0xd8] sm:$0xff] }
 0x1a6   :  { %1100 = vrcp.f32 %v169_v27  ;;  %v320_v27 = vld [vmem:[#allocation5 + $0xd0] sm:$0xff] }
 0x1b3   :  { %v1101_v28 = vpop.eup %1100 }
 0x1b4   :  { %v172_v29 = vmul.f32 %v1101_v28, %v163_v23  ;;  %v324_v23 = vld [vmem:[#allocation5 + $0xf0] sm:$0xff]  ;;  %v319_v28 = vld [vmem:[#allocation5 + $0xc8] sm:$0xff] }
 0x1b5   :  { %966 = vmatpush3.msra.mxu0 %v324_v23 }
 0x1b6   :  { %173 = vadd.xlane.f32.xlu0 %v172_v29  ;;  %v175_v30 = vmul.f32 %v172_v29, %v172_v29  ;;  %967 = vmatprep.subr.mxu0 %v1242_v3 }
 0x1b7   :  { %968 = vmatpush3.msra.mxu0 %v323_v24  ;;  %v431_v24 = vsub.s32 7, %v1311_v18 }
 0x1b8   :  { %176 = vadd.xlane.f32.xlu1 %v175_v30  ;;  %969 = vmatprep.subr.mxu0 %v1242_v3 }
 0x1b9   :  { %970 = vmatpush3.msra.mxu0 %v322_v25  ;;  %v436_v25 = vsub.s32 4, %v1311_v18 }
 0x1ba   :  { %971 = vmatprep.subr.mxu0 %v1242_v3 }
 0x1bb   :  { %972 = vmatpush3.msra.mxu0 %v321_v26 }
 0x1bc   :  { %973 = vmatprep.subr.mxu0 %v1242_v3 }
 0x1bd   :  { %974 = vmatpush3.msra.mxu0 %v320_v27  ;;  %v432_v27 = vrot.slane %v1314_v20, %v431_v24 }
 0x1be   :  { %975 = vmatprep.subr.mxu0 %v1242_v3 }
 0x1bf   :  { %976 = vmatpush3.msra.mxu0 %v319_v28 }
 0x1c0   :  { %977 = vmatprep.subr.mxu0 %v1242_v3 }
 0x23f   :  { %v174_v45 = vpop.xlane.xlu0 %173 }
 0x240   :  { %v178_v46 = vmul.f32 0.03125, %v174_v45 }
 0x241   :  { %v177_v47 = vpop.xlane.xlu1 %176 }
 0x242   :  { %v180_v48 = vmul.f32 %v178_v46, %v178_v46  ;;  %v179_v49 = vmul.f32 0.03125, %v177_v47  ;;  %v182_v55 = vsub.f32 %v172_v29, %v178_v46  ;;  %v318_v29 = vld [vmem:[#allocation5 + $0xc0] sm:$0xff]  ;;  %v455_v46 = vld [vmem:[#allocation5 + $0x1b8] sm:$0xff]  ;;  %v454_v47 = vld [vmem:[#allocation5 + $0x1b0] sm:$0xff] }
 0x243   :  { %978 = vmatpush3.msra.mxu0 %v318_v29 }
 0x244   :  { %v181_v50 = vsub.f32 %v179_v49, %v180_v48  ;;  %1017 = vmatprep.subr.mxu0 %v1242_v3  ;;  %v337_v48 = vrot.slane %v1314_v20, %v193_v53  ;;  %v452_v53 = vld [vmem:[#allocation5 + $0x1a0] sm:$0xff] }
 0x246   :  { %v183_v51 = vadd.f32 0.1, %v181_v50 }
 0x248   :  { %1102 = vrsqrt.f32 %v183_v51 }
 0x255   :  { %v1103_v57 = vpop.eup %1102 }
 0x256   :  { %v185_v58 = vmul.f32 %v1103_v57, %v182_v55 }
 0x258   :  { %v190_v60 = vmul.f32 %v189_v56, %v185_v58 }
 0x25a   :  { %v1343_v61 = vadd.f32 %v194_v59, %v190_v60 }
 0x25c   :  { %945 = vmatmul.mubr.f32.vlgmr.msra.gmra.mxu1 %v1343_v61 }
 0x25d   :  { %1014 = vmatprep.mubr.msk.f32.mxu1 %vm1243_vm1, %v1242_v3  ;;  %983 = vmatpush3.msra.mxu1 %v455_v46 }
 0x25e   :  { %984 = vmatprep.subr.mxu1 %v1242_v3 }
 0x25f   :  { %985 = vmatpush3.msra.mxu1 %v454_v47 }
 0x260   :  { %986 = vmatprep.subr.mxu1 %v1242_v3 }
 0x31c   :  { %v282_v2 = vpop.f32.mrf.mxu1 }
 0x31d   :  { %v283_v4 = vadd.f32 %v282_v2, %v215_v1  ;;  %v453_v1 = vld [vmem:[#allocation5 + $0x1a8] sm:$0xff]  ;;  %v450_v2 = vld [vmem:[#allocation5 + $0x190] sm:$0xff] }
 0x31e   :  { %v946_v5 = vpop.f32.mrf.mxu1  ;;  %987 = vmatpush3.msra.mxu1 %v453_v1  ;;  %v563_v1 = vld [vmem:[#allocation5 + $0x1c8] sm:$0xff] }
 0x31f   :  { %v286_v6 = vadd.f32 %v283_v4, %v1343_v61  ;;  %988 = vmatprep.subr.mxu1 %v1242_v3  ;;  %v449_v4 = vld [vmem:[#allocation5 + $0x188] sm:$0xff]  ;;  %v448_v5 = vld [vmem:[#allocation5 + $0x180] sm:$0xff] }
 0x320   :  { %989 = vmatpush3.msra.mxu1 %v452_v53  ;;  %v562_v53 = vld [vmem:[#allocation5 + $0x1c0] sm:$0xff] }
 0x321   :  { %v794_v7 = vmul.f32 -1.442695, %v286_v6  ;;  %990 = vmatprep.subr.mxu1 %v1242_v3 }
 0x323   :  { %1104 = vpow2.f32 %v794_v7  ;;  %v446_v7 = vld [vmem:[#allocation5 + $0x170] sm:$0xff] }
 0x330   :  { %v1105_v8 = vpop.eup %1104 }
 0x331   :  { %v290_v9 = vadd.f32 1.0, %v1105_v8  ;;  %v445_v8 = vld [vmem:[#allocation5 + $0x168] sm:$0xff] }
 0x333   :  { %1106 = vrcp.f32 %v290_v9  ;;  %v444_v9 = vld [vmem:[#allocation5 + $0x160] sm:$0xff] }
 0x340   :  { %v1107_v10 = vpop.eup %1106 }
 0x341   :  { %v293_v11 = vmul.f32 %v1107_v10, %v286_v6  ;;  %v447_v6 = vld [vmem:[#allocation5 + $0x178] sm:$0xff] }
 0x342   :  { %v443_v10 = vld [vmem:[#allocation5 + $0x158] sm:$0xff] }
 0x343   :  { %294 = vadd.xlane.f32.xlu1 %v293_v11  ;;  %v296_v12 = vmul.f32 %v293_v11, %v293_v11 }
 0x345   :  { %297 = vadd.xlane.f32.xlu0 %v296_v12  ;;  %v441_v12 = vld [vmem:[#allocation5 + $0x148] sm:$0xff] }
 0x3cc   :  { %v295_v30 = vpop.xlane.xlu1 %294 }
 0x3cd   :  { %v299_v31 = vmul.f32 0.03125, %v295_v30  ;;  %v437_v30 = vrot.slane %v1335_v54, %v436_v25 }
 0x3ce   :  { %v298_v32 = vpop.xlane.xlu0 %297 }
 0x3cf   :  { %v301_v33 = vmul.f32 %v299_v31, %v299_v31  ;;  %v300_v34 = vmul.f32 0.03125, %v298_v32  ;;  %v303_v39 = vsub.f32 %v293_v11, %v299_v31  ;;  %v442_v11 = vld [vmem:[#allocation5 + $0x150] sm:$0xff] }
 0x3d1   :  { %v302_v35 = vsub.f32 %v300_v34, %v301_v33  ;;  %v577_v33 = vld [vmem:[#allocation5 + $0x238] sm:$0xff]  ;;  %v576_v34 = vld [vmem:[#allocation5 + $0x230] sm:$0xff] }
 0x3d3   :  { %v304_v36 = vadd.f32 0.1, %v302_v35  ;;  %v459_v35 = vrot.slane %v1314_v20, %v314_v38  ;;  %v574_v38 = vld [vmem:[#allocation5 + $0x220] sm:$0xff] }
 0x3d5   :  { %1108 = vrsqrt.f32 %v304_v36 }
 0x3e2   :  { %v1109_v41 = vpop.eup %1108 }
 0x3e3   :  { %v306_v42 = vmul.f32 %v1109_v41, %v303_v39 }
 0x3e5   :  { %v311_v44 = vmul.f32 %v310_v40, %v306_v42 }
 0x3e7   :  { %v316_v45 = vadd.f32 %v315_v43, %v311_v44 }
 0x3e9   :  { %980 = vmatmul.mubr.f32.vlgmr.msra.gmra.mxu0 %v316_v45  ;;  %v1385_v50 = vadd.f32 %v316_v45, %v1343_v61  ;;  %v451_v61 = vld [vmem:[#allocation5 + $0x198] sm:$0xff] }
 0x3ea   :  { %1049 = vmatprep.mubr.msk.f32.mxu0 %vm1243_vm1, %v1242_v3  ;;  %991 = vmatpush3.msra.mxu1 %v451_v61 }
 0x3eb   :  { %992 = vmatprep.subr.mxu1 %v1242_v3  ;;  %1018 = vmatpush3.msra.mxu0 %v577_v33  ;;  %v693_v33 = vld [vmem:[#allocation8 + $0x50] sm:$0xff] }
 0x3ec   :  { %993 = vmatpush3.msra.mxu1 %v450_v2  ;;  %1019 = vmatprep.subr.mxu0 %v1242_v3 }
 0x3ed   :  { %994 = vmatprep.subr.mxu1 %v1242_v3  ;;  %1020 = vmatpush3.msra.mxu0 %v576_v34  ;;  %v692_v34 = vld [vmem:[#allocation8 + $0x48] sm:$0xff] }
 0x3ee   :  { %995 = vmatpush3.msra.mxu1 %v449_v4  ;;  %1021 = vmatprep.subr.mxu0 %v1242_v3 }
 0x3ef   :  { %996 = vmatprep.subr.mxu1 %v1242_v3 }
 0x3f0   :  { %997 = vmatpush3.msra.mxu1 %v448_v5 }
 0x3f1   :  { %998 = vmatprep.subr.mxu1 %v1242_v3 }
 0x3f2   :  { %999 = vmatpush3.msra.mxu1 %v447_v6 }
 0x3f3   :  { %1000 = vmatprep.subr.mxu1 %v1242_v3 }
 0x3f4   :  { %1001 = vmatpush3.msra.mxu1 %v446_v7 }
 0x3f5   :  { %1002 = vmatprep.subr.mxu1 %v1242_v3 }
 0x3f6   :  { %1003 = vmatpush3.msra.mxu1 %v445_v8 }
 0x3f7   :  { %1004 = vmatprep.subr.mxu1 %v1242_v3 }
 0x3f8   :  { %1005 = vmatpush3.msra.mxu1 %v444_v9  ;;  %v554_v9 = vrot.slane %v1335_v54, %v91_v19  ;;  %v581_v19 = vrot.slane %v1314_v20, %v436_v25  ;;  %v695_v20 = vld [vmem:[#allocation8 + $0x60] sm:$0xff]  ;;  %v694_v25 = vld [vmem:[#allocation8 + $0x58] sm:$0xff] }
 0x3f9   :  { %1006 = vmatprep.subr.mxu1 %v1242_v3 }
 0x3fa   :  { %1007 = vmatpush3.msra.mxu1 %v443_v10 }
 0x3fb   :  { %1008 = vmatprep.subr.mxu1 %v1242_v3 }
 0x3fc   :  { %1009 = vmatpush3.msra.mxu1 %v442_v11 }
 0x3fd   :  { %1010 = vmatprep.subr.mxu1 %v1242_v3 }
 0x3fe   :  { %1011 = vmatpush3.msra.mxu1 %v441_v12 }
 0x3ff   :  { %1012 = vmatprep.subr.mxu1 %v1242_v3 }
 0x400   :  { %1013 = vmatpush3.msra.mxu1 %v440_v13  ;;  %v559_v13 = vrot.slane %v1335_v54, %v188_v52 }
 0x401   :  { %1052 = vmatprep.subr.mxu1 %v1242_v3 }
 0x4a9   :  { %v404_v49 = vpop.f32.mrf.mxu0 }
 0x4aa   :  { %v405_v51 = vadd.f32 %v404_v49, %v337_v48  ;;  %v575_v49 = vld [vmem:[#allocation5 + $0x228] sm:$0xff] }
 0x4ab   :  { %v981_v55 = vpop.f32.mrf.mxu0  ;;  %1022 = vmatpush3.msra.mxu0 %v575_v49 }
 0x4ac   :  { %v408_v56 = vadd.f32 %v405_v51, %v1385_v50  ;;  %1023 = vmatprep.subr.mxu0 %v1242_v3  ;;  %v572_v51 = vld [vmem:[#allocation5 + $0x210] sm:$0xff]  ;;  %v571_v55 = vld [vmem:[#allocation5 + $0x208] sm:$0xff] }
 0x4ad   :  { %1024 = vmatpush3.msra.mxu0 %v574_v38 }
 0x4ae   :  { %v795_v57 = vmul.f32 -1.442695, %v408_v56  ;;  %1025 = vmatprep.subr.mxu0 %v1242_v3 }
 0x4b0   :  { %1110 = vpow2.f32 %v795_v57  ;;  %v569_v57 = vld [vmem:[#allocation5 + $0x1f8] sm:$0xff] }
 0x4bd   :  { %v1111_v58 = vpop.eup %1110 }
 0x4be   :  { %v412_v59 = vadd.f32 1.0, %v1111_v58  ;;  %v568_v58 = vld [vmem:[#allocation5 + $0x1f0] sm:$0xff] }
 0x4c0   :  { %1112 = vrcp.f32 %v412_v59  ;;  %v567_v59 = vld [vmem:[#allocation5 + $0x1e8] sm:$0xff] }
 0x4cd   :  { %v1113_v60 = vpop.eup %1112 }
 0x4ce   :  { %v415_v62 = vmul.f32 %v1113_v60, %v408_v56  ;;  %v570_v56 = vld [vmem:[#allocation5 + $0x200] sm:$0xff] }
 0x4cf   :  { %v566_v60 = vld [vmem:[#allocation5 + $0x1e0] sm:$0xff] }
 0x4d0   :  { %416 = vadd.xlane.f32.xlu1 %v415_v62  ;;  %v418_v63 = vmul.f32 %v415_v62, %v415_v62 }
 0x4d2   :  { %419 = vadd.xlane.f32.xlu0 %v418_v63  ;;  %v564_v63 = vld [vmem:[#allocation5 + $0x1d0] sm:$0xff] }
 0x559   :  { %v417_v14 = vpop.xlane.xlu1 %416 }
 0x55a   :  { %v421_v15 = vmul.f32 0.03125, %v417_v14 }
 0x55b   :  { %v420_v16 = vpop.xlane.xlu0 %419 }
 0x55c   :  { %v423_v17 = vmul.f32 %v421_v15, %v421_v15  ;;  %v422_v21 = vmul.f32 0.03125, %v420_v16  ;;  %v425_v26 = vsub.f32 %v415_v62, %v421_v15  ;;  %v565_v62 = vld [vmem:[#allocation5 + $0x1d8] sm:$0xff]  ;;  %v698_v16 = vld [vmem:[#allocation8 + $0x78] sm:$0xff] }
 0x55e   :  { %v424_v22 = vsub.f32 %v422_v21, %v423_v17  ;;  %v697_v17 = vld [vmem:[#allocation8 + $0x70] sm:$0xff] }
 0x560   :  { %v426_v23 = vadd.f32 0.1, %v424_v22 }
 0x562   :  { %1114 = vrsqrt.f32 %v426_v23 }
 0x56f   :  { %v1115_v28 = vpop.eup %1114 }
 0x570   :  { %v428_v29 = vmul.f32 %v1115_v28, %v425_v26 }
 0x572   :  { %v433_v31 = vmul.f32 %v432_v27, %v428_v29 }
 0x574   :  { %v438_v32 = vadd.f32 %v437_v30, %v433_v31 }
 0x576   :  { %1015 = vmatmul.mubr.f32.vlgmr.msra.gmra.mxu1 %v438_v32  ;;  %v1416_v39 = vadd.f32 %v438_v32, %v1385_v50  ;;  %v573_v50 = vld [vmem:[#allocation5 + $0x218] sm:$0xff] }
 0x577   :  { %1084 = vmatprep.mubr.msk.f32.mxu1 %vm1243_vm1, %v1242_v3  ;;  %1026 = vmatpush3.msra.mxu0 %v573_v50  ;;  %v696_v32 = vld [vmem:[#allocation8 + $0x68] sm:$0xff] }
 0x578   :  { %1027 = vmatprep.subr.mxu0 %v1242_v3  ;;  %1053 = vmatpush3.msra.mxu1 %v698_v16 }
 0x579   :  { %1028 = vmatpush3.msra.mxu0 %v572_v51  ;;  %1054 = vmatprep.subr.mxu1 %v1242_v3 }
 0x57a   :  { %1029 = vmatprep.subr.mxu0 %v1242_v3  ;;  %1055 = vmatpush3.msra.mxu1 %v697_v17 }
 0x57b   :  { %1030 = vmatpush3.msra.mxu0 %v571_v55  ;;  %1056 = vmatprep.subr.mxu1 %v1242_v3  ;;  %v676_v55 = vrot.slane %v1335_v54, %v214_v0 }
 0x57c   :  { %1031 = vmatprep.subr.mxu0 %v1242_v3  ;;  %1057 = vmatpush3.msra.mxu1 %v696_v32 }
 0x57d   :  { %1032 = vmatpush3.msra.mxu0 %v570_v56  ;;  %1058 = vmatprep.subr.mxu1 %v1242_v3 }
 0x57e   :  { %1033 = vmatprep.subr.mxu0 %v1242_v3  ;;  %1059 = vmatpush3.msra.mxu1 %v695_v20 }
 0x57f   :  { %1034 = vmatpush3.msra.mxu0 %v569_v57  ;;  %1060 = vmatprep.subr.mxu1 %v1242_v3 }
 0x580   :  { %1035 = vmatprep.subr.mxu0 %v1242_v3  ;;  %1061 = vmatpush3.msra.mxu1 %v694_v25 }
 0x581   :  { %1036 = vmatpush3.msra.mxu0 %v568_v58  ;;  %1062 = vmatprep.subr.mxu1 %v1242_v3 }
 0x582   :  { %1037 = vmatprep.subr.mxu0 %v1242_v3  ;;  %1063 = vmatpush3.msra.mxu1 %v693_v33 }
 0x583   :  { %1038 = vmatpush3.msra.mxu0 %v567_v59  ;;  %1064 = vmatprep.subr.mxu1 %v1242_v3 }
 0x584   :  { %1039 = vmatprep.subr.mxu0 %v1242_v3  ;;  %1065 = vmatpush3.msra.mxu1 %v692_v34 }
 0x585   :  { %1040 = vmatpush3.msra.mxu0 %v566_v60  ;;  %1066 = vmatprep.subr.mxu1 %v1242_v3 }
 0x586   :  { %1041 = vmatprep.subr.mxu0 %v1242_v3 }
 0x587   :  { %1042 = vmatpush3.msra.mxu0 %v565_v62  ;;  %v798_v62 = vld [vmem:[#allocation8 + $0x80] ss:$0 sm:$0xff] }
 0x588   :  { %1043 = vmatprep.subr.mxu0 %v1242_v3 }
 0x589   :  { %1044 = vmatpush3.msra.mxu0 %v564_v63 }
 0x58a   :  { %1045 = vmatprep.subr.mxu0 %v1242_v3 }
 0x58b   :  { %1046 = vmatpush3.msra.mxu0 %v563_v1 }
 0x58c   :  { %1047 = vmatprep.subr.mxu0 %v1242_v3 }
 0x58d   :  { %1048 = vmatpush3.msra.mxu0 %v562_v53 }
 0x636   :  { %v526_v36 = vpop.f32.mrf.mxu1 }
 0x637   :  { %v527_v40 = vadd.f32 %v526_v36, %v459_v35  ;;  %v691_v35 = vld [vmem:[#allocation8 + $0x40] sm:$0xff]  ;;  %v690_v36 = vld [vmem:[#allocation8 + $0x38] sm:$0xff] }
 0x638   :  { %v1016_v41 = vpop.f32.mrf.mxu1  ;;  %1067 = vmatpush3.msra.mxu1 %v691_v35 }
 0x639   :  { %v530_v42 = vadd.f32 %v527_v40, %v1416_v39  ;;  %1068 = vmatprep.subr.mxu1 %v1242_v3  ;;  %v688_v40 = vld [vmem:[#allocation8 + $0x28] sm:$0xff]  ;;  %v687_v41 = vld [vmem:[#allocation8 + $0x20] sm:$0xff] }
 0x63a   :  { %1069 = vmatpush3.msra.mxu1 %v690_v36 }
 0x63b   :  { %v796_v43 = vmul.f32 -1.442695, %v530_v42  ;;  %1070 = vmatprep.subr.mxu1 %v1242_v3 }
 0x63d   :  { %1116 = vpow2.f32 %v796_v43  ;;  %v685_v43 = vld [vmem:[#allocation8 + $0x10] sm:$0xff] }
 0x64a   :  { %v1117_v44 = vpop.eup %1116 }
 0x64b   :  { %v534_v45 = vadd.f32 1.0, %v1117_v44  ;;  %v684_v44 = vld [vmem:[#allocation8 + $0x8] sm:$0xff] }
 0x64d   :  { %1118 = vrcp.f32 %v534_v45  ;;  %v683_v45 = vld [vmem:[#allocation8] sm:$0xff] }
 0x65a   :  { %v1119_v46 = vpop.eup %1118 }
 0x65b   :  { %v537_v47 = vmul.f32 %v1119_v46, %v530_v42  ;;  %v686_v42 = vld [vmem:[#allocation8 + $0x18] sm:$0xff] }
 0x65d   :  { %538 = vadd.xlane.f32.xlu1 %v537_v47  ;;  %v540_v48 = vmul.f32 %v537_v47, %v537_v47 }
 0x65f   :  { %541 = vadd.xlane.f32.xlu0 %v540_v48 }
 0x6e6   :  { %v539_v61 = vpop.xlane.xlu1 %538 }
 0x6e7   :  { %v543_v2 = vmul.f32 0.03125, %v539_v61 }
 0x6e8   :  { %v542_v4 = vpop.xlane.xlu0 %541 }
 0x6e9   :  { %v545_v5 = vmul.f32 %v543_v2, %v543_v2  ;;  %v544_v6 = vmul.f32 0.03125, %v542_v4  ;;  %v547_v10 = vsub.f32 %v537_v47, %v543_v2 }
 0x6eb   :  { %v546_v7 = vsub.f32 %v544_v6, %v545_v5 }
 0x6ed   :  { %v548_v8 = vadd.f32 0.1, %v546_v7 }
 0x6ef   :  { %1120 = vrsqrt.f32 %v548_v8 }
 0x6fc   :  { %v1121_v11 = vpop.eup %1120 }
 0x6fd   :  { %v550_v12 = vmul.f32 %v1121_v11, %v547_v10 }
 0x6ff   :  { %v555_v14 = vmul.f32 %v554_v9, %v550_v12 }
 0x701   :  { %v560_v15 = vadd.f32 %v559_v13, %v555_v14 }
 0x703   :  { %1050 = vmatmul.mubr.f32.vlgmr.msra.gmra.mxu0 %v560_v15  ;;  %v561_v22 = vadd.f32 %v560_v15, %v1416_v39  ;;  %v689_v39 = vld [vmem:[#allocation8 + $0x30] sm:$0xff] }
 0x704   :  { %1071 = vmatpush3.msra.mxu1 %v689_v39 }
 0x705   :  { %1072 = vmatprep.subr.mxu1 %v1242_v3 }
 0x706   :  { %1073 = vmatpush3.msra.mxu1 %v688_v40 }
 0x707   :  { %1074 = vmatprep.subr.mxu1 %v1242_v3 }
 0x708   :  { %1075 = vmatpush3.msra.mxu1 %v687_v41 }
 0x709   :  { %1076 = vmatprep.subr.mxu1 %v1242_v3 }
 0x70a   :  { %1077 = vmatpush3.msra.mxu1 %v686_v42 }
 0x70b   :  { %1078 = vmatprep.subr.mxu1 %v1242_v3 }
 0x70c   :  { %1079 = vmatpush3.msra.mxu1 %v685_v43 }
 0x70d   :  { %1080 = vmatprep.subr.mxu1 %v1242_v3 }
 0x70e   :  { %1081 = vmatpush3.msra.mxu1 %v684_v44 }
 0x70f   :  { %1082 = vmatprep.subr.mxu1 %v1242_v3  ;;  %v681_v3 = vrot.slane %v1335_v54, %v309_v37 }
 0x710   :  { %1083 = vmatpush3.msra.mxu1 %v683_v45 }
 0x7c3   :  { %v648_v21 = vpop.f32.mrf.mxu0 }
 0x7c4   :  { %v649_v23 = vadd.f32 %v648_v21, %v581_v19 }
 0x7c5   :  { %v1051_v52 = vpop.f32.mrf.mxu0 }
 0x7c6   :  { %v652_v24 = vadd.f32 %v649_v23, %v561_v22 }
 0x7c8   :  { %v797_v26 = vmul.f32 -1.442695, %v652_v24 }
 0x7ca   :  { %1122 = vpow2.f32 %v797_v26 }
 0x7d7   :  { %v1123_v27 = vpop.eup %1122 }
 0x7d8   :  { %v656_v28 = vadd.f32 1.0, %v1123_v27 }
 0x7da   :  { %1124 = vrcp.f32 %v656_v28 }
 0x7e7   :  { %v1125_v29 = vpop.eup %1124 }
 0x7e8   :  { %v659_v30 = vmul.f32 %v1125_v29, %v652_v24 }
 0x7ea   :  { %660 = vadd.xlane.f32.xlu1 %v659_v30  ;;  %v662_v31 = vmul.f32 %v659_v30, %v659_v30 }
 0x7ec   :  { %663 = vadd.xlane.f32.xlu0 %v662_v31 }
 0x873   :  { %v661_v46 = vpop.xlane.xlu1 %660 }
 0x874   :  { %v665_v47 = vmul.f32 0.03125, %v661_v46 }
 0x875   :  { %v664_v48 = vpop.xlane.xlu0 %663 }
 0x876   :  { %v667_v49 = vmul.f32 %v665_v47, %v665_v47  ;;  %v666_v38 = vmul.f32 0.03125, %v664_v48  ;;  %v669_v56 = vsub.f32 %v659_v30, %v665_v47 }
 0x878   :  { %v668_v50 = vsub.f32 %v666_v38, %v667_v49 }
 0x87a   :  { %v670_v51 = vadd.f32 0.1, %v668_v50 }
 0x87c   :  { %1126 = vrsqrt.f32 %v670_v51 }
 0x889   :  { %v1127_v57 = vpop.eup %1126 }
 0x88a   :  { %v672_v58 = vmul.f32 %v1127_v57, %v669_v56 }
 0x88c   :  { %v677_v59 = vmul.f32 %v676_v55, %v672_v58 }
 0x88e   :  { %v682_v60 = vadd.f32 %v681_v3, %v677_v59 }
 0x890   :  { %1085 = vmatmul.mubr.f32.vlgmr.msra.gmra.mxu1 %v682_v60 }
 0x950   :  { %v770_v63 = vpop.f32.mrf.mxu1 }
 0x951   :  { %v771_v1 = vadd.f32 %v798_v62, %v770_v63 }
 0x952   :  { %v1086_v53 = vpop.f32.mrf.mxu1 }
 0x953   :  { %774 = vst [vmem:[#allocation10] sm:$0xff] %v771_v1 }
 0x954   :  { %1219 = shalt.err (!%p1216_p10)
}
 0x955   :  { %784 = dma.vmem_to_hbm [thread:$0]  %s782_s3, 128, %s1470_s4, [#allocation4]  }
 0x956   :  { %1234 = dma.done.wait [#allocation4], 128  }
 0x957   :  { %1235 = vsyncadd [#allocation4], 4294967168 }
 0x958   :  { %788 = vsyncpa [#allocation3], 1 }
 0x959   :  { %789 = vsyncpa [#allocation6], 1 }
 0x95a   :  { %790 = vsyncpa [#allocation9], 1 }
 0x95b   :  { %791 = vsyncpa [#allocation4], 1 }

// kernel: tpu_custom_call.1
= control target key start
LH: loop header
LB: loop body
LE: loop exit
PB: predicated region body
PF: predicated region fallthrough
CT: control target
= control target key end

     0   :  { %9 = vsyncpa [#allocation3], 0  ;;  %s1466_s0 = inlined_call_operand.hbm [shape: f32[8,64], index: 0, kind: input, shape index: {}]   ;;  %s1467_s1 = inlined_call_operand.hbm [shape: f32[576,128], index: 1, kind: input, shape index: {}]   ;;  %s1468_s2 = inlined_call_operand.hbm [shape: f32[15,128], index: 2, kind: input, shape index: {}]   ;;  %s1469_s3 = inlined_call_operand.hbm [shape: f32[129,128], index: 3, kind: input, shape index: {}]   ;;  %s1470_s4 = inlined_call_operand.hbm [shape: f32[8,128], index: 4, kind: output, shape index: {}]  }
   0x1   :  { %10 = vsyncpa [#allocation6], 0 }
   0x2   :  { %11 = vsyncpa [#allocation9], 0 }
   0x3   :  { %12 = vsyncpa [#allocation4], 0  ;;  %s1236_s15 = smov [#allocation5]  }
   0x4   :  { %s28_s16 = sshll.u32 %s1236_s15, 4  ;;  %s29_s16 = int_to_ptr.vmem [resolvable:$true] %s28_s16 }
   0x5   :  { %s1136_s17 = scalar_lea.vmem %s29_s16, 9216  ;;  %p1141_p1 = scmp.lt.s32.totalorder %s29_s16, %s29_s16 }
   0x6   :  { %p1137_p0 = scmp.ne.s32.totalorder %s29_s16, %s1136_s17  ;;  %p1142_p2 = scmp.lt.s32.totalorder %s1136_s17, %s1136_s17 }
   0x8   :  { %p1143_p3 = por %p1142_p2, %p1141_p1 }
   0xa   :  { %p1144_p4 = pnand %p1143_p3, %p1137_p0 }
   0xc   :  { %1147 = shalt.err (!%p1144_p4)
}
   0xd   :  { %s1237_s18 = smov 128   ;;  %s1238_s19 = smov 8  }
   0xe   :  { %34 = dma.hbm_to_vmem [thread:$0]  %s1467_s1, 9216, %s29_s16, [#allocation6], %s1237_s18, %s1237_s18, %s1238_s19  }
   0xf   :  { %s1239_s22 = smov [#allocation2]   ;;  %s1240_s24 = smov [#allocation7]  }
  0x10   :  { %s19_s23 = sshll.u32 %s1239_s22, 4  ;;  %s40_s25 = sshll.u32 %s1240_s24, 4  ;;  %s20_s23 = int_to_ptr.vmem [resolvable:$true] %s19_s23  ;;  %s41_s25 = int_to_ptr.vmem [resolvable:$true] %s40_s25 }
  0x11   :  { %s1156_s26 = scalar_lea.vmem %s20_s23, 128  ;;  %p1161_p6 = scmp.lt.s32.totalorder %s20_s23, %s20_s23 }
  0x12   :  { %p1157_p5 = scmp.ne.s32.totalorder %s20_s23, %s1156_s26  ;;  %p1162_p7 = scmp.lt.s32.totalorder %s1156_s26, %s1156_s26 }
  0x14   :  { %p1163_p8 = por %p1162_p7, %p1161_p6 }
  0x16   :  { %p1164_p9 = pnand %p1163_p8, %p1157_p5 }
  0x18   :  { %1167 = shalt.err (!%p1164_p9)
}
  0x19   :  { %22 = dma.hbm_to_vmem [thread:$0]  %s1466_s0, 128, %s20_s23, [#allocation3]  }
  0x1a   :  { %s1176_s29 = scalar_lea.vmem %s41_s25, 256  ;;  %p1181_p11 = scmp.lt.s32.totalorder %s41_s25, %s41_s25 }
  0x1b   :  { %p1177_p10 = scmp.ne.s32.totalorder %s41_s25, %s1176_s29  ;;  %p1182_p12 = scmp.lt.s32.totalorder %s1176_s29, %s1176_s29 }
  0x1d   :  { %p1183_p13 = por %p1182_p12, %p1181_p11 }
  0x1f   :  { %p1184_p0 = pnand %p1183_p13, %p1177_p10 }
  0x21   :  { %1187 = shalt.err (!%p1184_p0)
}
  0x22   :  { %46 = dma.hbm_to_vmem [thread:$0]  %s1468_s2, 256, %s41_s25, [#allocation6], %s1237_s18, %s1237_s18, %s1238_s19  }
  0x23   :  { %s1241_s5 = smov [#allocation8]  }
  0x24   :  { %s52_s6 = sshll.u32 %s1241_s5, 4  ;;  %s53_s6 = int_to_ptr.vmem [resolvable:$true] %s52_s6 }
  0x25   :  { %s1196_s7 = scalar_lea.vmem %s53_s6, 2176  ;;  %p1201_p2 = scmp.lt.s32.totalorder %s53_s6, %s53_s6 }
  0x26   :  { %p1197_p1 = scmp.ne.s32.totalorder %s53_s6, %s1196_s7  ;;  %p1202_p3 = scmp.lt.s32.totalorder %s1196_s7, %s1196_s7 }
  0x28   :  { %p1203_p4 = por %p1202_p3, %p1201_p2 }
  0x2a   :  { %p1204_p5 = pnand %p1203_p4, %p1197_p1 }
  0x2c   :  { %1207 = shalt.err (!%p1204_p5)
}
  0x2d   :  { %58 = dma.hbm_to_vmem [thread:$0]  %s1469_s3, 2176, %s53_s6, [#allocation9], %s1237_s18, %s1237_s18, %s1238_s19  }
  0x2e   :  { %1228 = dma.done.wait [#allocation3], 128  }
  0x2f   :  { %1229 = vsyncadd [#allocation3], 4294967168 }
  0x30   :  { %1230 = dma.done.wait [#allocation6], 9472  }
  0x31   :  { %1231 = vsyncadd [#allocation6], 4294957824 }
  0x32   :  { %1232 = dma.done.wait [#allocation9], 2176  }
  0x33   :  { %1233 = vsyncadd [#allocation9], 4294965120  ;;  %v71_v0 = vld [vmem:[#allocation2] sm:$0xff]  ;;  %vm73_vm0 = vcmask 523264   ;;  %v1242_v3 = vmov 0.0   ;;  %v87_v5 = vld [vmem:[#allocation5 + $0x30] sm:$0xff]  ;;  %v89_v17 = vlaneseq }
  0x34   :  { %v72_v1 = vmul.f32 %v71_v0, %v71_v0  ;;  %893 = vmatprep.subr.mxu0 %v1242_v3  ;;  %v88_v4 = vld [vmem:[#allocation5 + $0x38] sm:$0xff]  ;;  %912 = vmatprep.subr.mxu1 %v1242_v3  ;;  %vm1243_vm1 = vmmov 0   ;;  %v86_v6 = vld [vmem:[#allocation5 + $0x28] sm:$0xff]  ;;  %v85_v7 = vld [vmem:[#allocation5 + $0x20] sm:$0xff]  ;;  %s1244_s2 = smov [#allocation10]  }
  0x35   :  { %894 = vmatpush3.msra.mxu0 %v88_v4  ;;  %909 = vmatprep.mubr.msk.f32.mxu0 %vm1243_vm1, %v1242_v3  ;;  %v84_v8 = vld [vmem:[#allocation5 + $0x18] sm:$0xff]  ;;  %v83_v9 = vld [vmem:[#allocation5 + $0x10] sm:$0xff]  ;;  %v82_v10 = vld [vmem:[#allocation5 + $0x8] sm:$0xff]  ;;  %v1311_v18 = vshrl.u32 %v89_v17, 7  ;;  %s781_s3 = sshll.u32 %s1244_s2, 4  ;;  %s782_s3 = int_to_ptr.vmem [resolvable:$true] %s781_s3 }
  0x36   :  { %v74_v2 = vsel %vm73_vm0, %v72_v1, 0.0  ;;  %895 = vmatprep.subr.mxu0 %v1242_v3  ;;  %944 = vmatprep.mubr.msk.f32.mxu1 %vm1243_vm1, %v1242_v3  ;;  %v81_v11 = vld [vmem:[#allocation5] sm:$0xff]  ;;  %v211_v15 = vld [vmem:[#allocation5 + $0xb8] sm:$0xff]  ;;  %v210_v16 = vld [vmem:[#allocation5 + $0xb0] sm:$0xff]  ;;  %s1208_s9 = scalar_lea.vmem %s782_s3, 128  ;;  %p1213_p7 = scmp.lt.s32.totalorder %s782_s3, %s782_s3 }
  0x37   :  { %75 = vadd.xlane.f32.xlu0 %v74_v2  ;;  %896 = vmatpush3.msra.mxu0 %v87_v5  ;;  %v91_v19 = vsub.s32 0, %v1311_v18  ;;  %v1314_v20 = vld [vmem:[#allocation7] sm:$0xff]  ;;  %v209_v31 = vld [vmem:[#allocation5 + $0xa8] sm:$0xff]  ;;  %v207_v33 = vld [vmem:[#allocation5 + $0x98] sm:$0xff]  ;;  %v188_v52 = vsub.s32 5, %v1311_v18  ;;  %v193_v53 = vsub.s32 2, %v1311_v18  ;;  %p1209_p6 = scmp.ne.s32.totalorder %s782_s3, %s1208_s9  ;;  %p1214_p8 = scmp.lt.s32.totalorder %s1208_s9, %s1208_s9 }
  0x38   :  { %897 = vmatprep.subr.mxu0 %v1242_v3  ;;  %913 = vmatpush3.msra.mxu1 %v211_v15  ;;  %v208_v32 = vld [vmem:[#allocation5 + $0xa0] sm:$0xff]  ;;  %v206_v34 = vld [vmem:[#allocation5 + $0x90] sm:$0xff]  ;;  %v205_v35 = vld [vmem:[#allocation5 + $0x88] sm:$0xff] }
  0x39   :  { %898 = vmatpush3.msra.mxu0 %v86_v6  ;;  %914 = vmatprep.subr.mxu1 %v1242_v3  ;;  %v92_v21 = vrot.slane %v1314_v20, %v91_v19  ;;  %v204_v36 = vld [vmem:[#allocation5 + $0x80] sm:$0xff]  ;;  %v203_v37 = vld [vmem:[#allocation5 + $0x78] sm:$0xff]  ;;  %v202_v38 = vld [vmem:[#allocation5 + $0x70] sm:$0xff]  ;;  %v189_v56 = vrot.slane %v1314_v20, %v188_v52  ;;  %p1215_p9 = por %p1214_p8, %p1213_p7 }
  0x3a   :  { %899 = vmatprep.subr.mxu0 %v1242_v3  ;;  %915 = vmatpush3.msra.mxu1 %v210_v16  ;;  %v201_v39 = vld [vmem:[#allocation5 + $0x68] sm:$0xff]  ;;  %v200_v40 = vld [vmem:[#allocation5 + $0x60] sm:$0xff]  ;;  %v199_v41 = vld [vmem:[#allocation5 + $0x58] sm:$0xff] }
  0x3b   :  { %900 = vmatpush3.msra.mxu0 %v85_v7  ;;  %916 = vmatprep.subr.mxu1 %v1242_v3  ;;  %v198_v42 = vld [vmem:[#allocation5 + $0x50] sm:$0xff]  ;;  %v197_v43 = vld [vmem:[#allocation5 + $0x48] sm:$0xff]  ;;  %v196_v44 = vld [vmem:[#allocation5 + $0x40] sm:$0xff]  ;;  %p1216_p10 = pnand %p1215_p9, %p1209_p6 }
  0x3c   :  { %901 = vmatprep.subr.mxu0 %v1242_v3  ;;  %917 = vmatpush3.msra.mxu1 %v209_v31  ;;  %v1335_v54 = vld [vmem:[#allocation7 + $0x8] sm:$0x7f]  ;;  %v333_v62 = vld [vmem:[#allocation5 + $0x138] sm:$0xff]  ;;  %v332_v63 = vld [vmem:[#allocation5 + $0x130] sm:$0xff] }
  0x3d   :  { %902 = vmatpush3.msra.mxu0 %v84_v8  ;;  %918 = vmatprep.subr.mxu1 %v1242_v3  ;;  %v194_v59 = vrot.slane %v1335_v54, %v193_v53  ;;  %v329_v15 = vld [vmem:[#allocation5 + $0x118] sm:$0xff]  ;;  %v328_v16 = vld [vmem:[#allocation5 + $0x110] sm:$0xff]  ;;  %v327_v17 = vld [vmem:[#allocation5 + $0x108] sm:$0xff] }
  0x3e   :  { %903 = vmatprep.subr.mxu0 %v1242_v3  ;;  %919 = vmatpush3.msra.mxu1 %v208_v32 }
  0x3f   :  { %904 = vmatpush3.msra.mxu0 %v83_v9  ;;  %920 = vmatprep.subr.mxu1 %v1242_v3 }
  0x40   :  { %905 = vmatprep.subr.mxu0 %v1242_v3  ;;  %921 = vmatpush3.msra.mxu1 %v207_v33 }
  0x41   :  { %906 = vmatpush3.msra.mxu0 %v82_v10  ;;  %922 = vmatprep.subr.mxu1 %v1242_v3 }
  0x42   :  { %907 = vmatprep.subr.mxu0 %v1242_v3  ;;  %923 = vmatpush3.msra.mxu1 %v206_v34 }
  0x43   :  { %908 = vmatpush3.msra.mxu0 %v81_v11  ;;  %924 = vmatprep.subr.mxu1 %v1242_v3 }
  0x44   :  { %947 = vmatprep.subr.mxu0 %v1242_v3  ;;  %925 = vmatpush3.msra.mxu1 %v205_v35 }
  0x45   :  { %926 = vmatprep.subr.mxu1 %v1242_v3 }
  0x46   :  { %927 = vmatpush3.msra.mxu1 %v204_v36 }
  0x47   :  { %928 = vmatprep.subr.mxu1 %v1242_v3 }
  0x48   :  { %929 = vmatpush3.msra.mxu1 %v203_v37  ;;  %v309_v37 = vsub.s32 6, %v1311_v18 }
  0x49   :  { %930 = vmatprep.subr.mxu1 %v1242_v3 }
  0x4a   :  { %931 = vmatpush3.msra.mxu1 %v202_v38  ;;  %v314_v38 = vsub.s32 3, %v1311_v18 }
  0x4b   :  { %932 = vmatprep.subr.mxu1 %v1242_v3 }
  0x4c   :  { %933 = vmatpush3.msra.mxu1 %v201_v39 }
  0x4d   :  { %934 = vmatprep.subr.mxu1 %v1242_v3 }
  0x4e   :  { %935 = vmatpush3.msra.mxu1 %v200_v40  ;;  %v310_v40 = vrot.slane %v1314_v20, %v309_v37 }
  0x4f   :  { %936 = vmatprep.subr.mxu1 %v1242_v3 }
  0x50   :  { %937 = vmatpush3.msra.mxu1 %v199_v41 }
  0x51   :  { %938 = vmatprep.subr.mxu1 %v1242_v3 }
  0x52   :  { %939 = vmatpush3.msra.mxu1 %v198_v42 }
  0x53   :  { %940 = vmatprep.subr.mxu1 %v1242_v3 }
  0x54   :  { %941 = vmatpush3.msra.mxu1 %v197_v43  ;;  %v315_v43 = vrot.slane %v1335_v54, %v314_v38 }
  0x55   :  { %942 = vmatprep.subr.mxu1 %v1242_v3 }
  0x56   :  { %943 = vmatpush3.msra.mxu1 %v196_v44 }
  0x57   :  { %982 = vmatprep.subr.mxu1 %v1242_v3 }
  0xc0   :  { %v76_v12 = vpop.xlane.xlu0 %75 }
  0xc1   :  { %1096 = vrsqrt.f32 %v76_v12 }
  0xce   :  { %v1097_v13 = vpop.eup %1096 }
  0xcf   :  { %v78_v14 = vmul.f32 %v1097_v13, %v71_v0  ;;  %v214_v0 = vsub.s32 1, %v1311_v18  ;;  %v331_v13 = vld [vmem:[#allocation5 + $0x128] sm:$0xff] }
  0xd1   :  { %910 = vmatmul.mubr.msk.f32.vlgmr.msra.gmra.mxu0 %vm73_vm0, %v78_v14  ;;  %v215_v1 = vrot.slane %v1314_v20, %v214_v0  ;;  %v330_v14 = vld [vmem:[#allocation5 + $0x120] sm:$0xff] }
  0xd2   :  { %979 = vmatprep.mubr.msk.f32.mxu0 %vm1243_vm1, %v1242_v3  ;;  %948 = vmatpush3.msra.mxu0 %v333_v62 }
  0xd3   :  { %949 = vmatprep.subr.mxu0 %v1242_v3 }
  0xd4   :  { %950 = vmatpush3.msra.mxu0 %v332_v63 }
  0xd5   :  { %951 = vmatprep.subr.mxu0 %v1242_v3 }
  0xd6   :  { %952 = vmatpush3.msra.mxu0 %v331_v13  ;;  %v440_v13 = vld [vmem:[#allocation5 + $0x140] sm:$0xff] }
  0xd7   :  { %953 = vmatprep.subr.mxu0 %v1242_v3 }
  0xd8   :  { %954 = vmatpush3.msra.mxu0 %v330_v14 }
  0xd9   :  { %955 = vmatprep.subr.mxu0 %v1242_v3 }
  0xda   :  { %956 = vmatpush3.msra.mxu0 %v329_v15 }
  0xdb   :  { %957 = vmatprep.subr.mxu0 %v1242_v3 }
  0xdc   :  { %958 = vmatpush3.msra.mxu0 %v328_v16 }
  0xdd   :  { %959 = vmatprep.subr.mxu0 %v1242_v3 }
  0xde   :  { %960 = vmatpush3.msra.mxu0 %v327_v17 }
  0xdf   :  { %961 = vmatprep.subr.mxu0 %v1242_v3 }
 0x191   :  { %v162_v22 = vpop.f32.mrf.mxu0 }
 0x192   :  { %v163_v23 = vadd.f32 %v162_v22, %v92_v21  ;;  %v326_v21 = vld [vmem:[#allocation5 + $0x100] sm:$0xff]  ;;  %v325_v22 = vld [vmem:[#allocation5 + $0xf8] sm:$0xff] }
 0x193   :  { %v911_v24 = vpop.f32.mrf.mxu0  ;;  %962 = vmatpush3.msra.mxu0 %v326_v21 }
 0x194   :  { %v793_v25 = vmul.f32 -1.442695, %v163_v23  ;;  %963 = vmatprep.subr.mxu0 %v1242_v3  ;;  %v323_v24 = vld [vmem:[#allocation5 + $0xe8] sm:$0xff] }
 0x195   :  { %964 = vmatpush3.msra.mxu0 %v325_v22 }
 0x196   :  { %1098 = vpow2.f32 %v793_v25  ;;  %965 = vmatprep.subr.mxu0 %v1242_v3  ;;  %v322_v25 = vld [vmem:[#allocation5 + $0xe0] sm:$0xff] }
 0x1a3   :  { %v1099_v26 = vpop.eup %1098 }
 0x1a4   :  { %v169_v27 = vadd.f32 1.0, %v1099_v26  ;;  %v321_v26 = vld [vmem:[#allocation5 + $0xd8] sm:$0xff] }
 0x1a6   :  { %1100 = vrcp.f32 %v169_v27  ;;  %v320_v27 = vld [vmem:[#allocation5 + $0xd0] sm:$0xff] }
 0x1b3   :  { %v1101_v28 = vpop.eup %1100 }
 0x1b4   :  { %v172_v29 = vmul.f32 %v1101_v28, %v163_v23  ;;  %v324_v23 = vld [vmem:[#allocation5 + $0xf0] sm:$0xff]  ;;  %v319_v28 = vld [vmem:[#allocation5 + $0xc8] sm:$0xff] }
 0x1b5   :  { %966 = vmatpush3.msra.mxu0 %v324_v23 }
 0x1b6   :  { %173 = vadd.xlane.f32.xlu0 %v172_v29  ;;  %v175_v30 = vmul.f32 %v172_v29, %v172_v29  ;;  %967 = vmatprep.subr.mxu0 %v1242_v3 }
 0x1b7   :  { %968 = vmatpush3.msra.mxu0 %v323_v24  ;;  %v431_v24 = vsub.s32 7, %v1311_v18 }
 0x1b8   :  { %176 = vadd.xlane.f32.xlu1 %v175_v30  ;;  %969 = vmatprep.subr.mxu0 %v1242_v3 }
 0x1b9   :  { %970 = vmatpush3.msra.mxu0 %v322_v25  ;;  %v436_v25 = vsub.s32 4, %v1311_v18 }
 0x1ba   :  { %971 = vmatprep.subr.mxu0 %v1242_v3 }
 0x1bb   :  { %972 = vmatpush3.msra.mxu0 %v321_v26 }
 0x1bc   :  { %973 = vmatprep.subr.mxu0 %v1242_v3 }
 0x1bd   :  { %974 = vmatpush3.msra.mxu0 %v320_v27  ;;  %v432_v27 = vrot.slane %v1314_v20, %v431_v24 }
 0x1be   :  { %975 = vmatprep.subr.mxu0 %v1242_v3 }
 0x1bf   :  { %976 = vmatpush3.msra.mxu0 %v319_v28 }
 0x1c0   :  { %977 = vmatprep.subr.mxu0 %v1242_v3 }
 0x23f   :  { %v174_v45 = vpop.xlane.xlu0 %173 }
 0x240   :  { %v178_v46 = vmul.f32 0.03125, %v174_v45 }
 0x241   :  { %v177_v47 = vpop.xlane.xlu1 %176 }
 0x242   :  { %v180_v48 = vmul.f32 %v178_v46, %v178_v46  ;;  %v179_v49 = vmul.f32 0.03125, %v177_v47  ;;  %v182_v55 = vsub.f32 %v172_v29, %v178_v46  ;;  %v318_v29 = vld [vmem:[#allocation5 + $0xc0] sm:$0xff]  ;;  %v455_v46 = vld [vmem:[#allocation5 + $0x1b8] sm:$0xff]  ;;  %v454_v47 = vld [vmem:[#allocation5 + $0x1b0] sm:$0xff] }
 0x243   :  { %978 = vmatpush3.msra.mxu0 %v318_v29 }
 0x244   :  { %v181_v50 = vsub.f32 %v179_v49, %v180_v48  ;;  %1017 = vmatprep.subr.mxu0 %v1242_v3  ;;  %v337_v48 = vrot.slane %v1314_v20, %v193_v53  ;;  %v452_v53 = vld [vmem:[#allocation5 + $0x1a0] sm:$0xff] }
 0x246   :  { %v183_v51 = vadd.f32 0.1, %v181_v50 }
 0x248   :  { %1102 = vrsqrt.f32 %v183_v51 }
 0x255   :  { %v1103_v57 = vpop.eup %1102 }
 0x256   :  { %v185_v58 = vmul.f32 %v1103_v57, %v182_v55 }
 0x258   :  { %v190_v60 = vmul.f32 %v189_v56, %v185_v58 }
 0x25a   :  { %v1343_v61 = vadd.f32 %v194_v59, %v190_v60 }
 0x25c   :  { %945 = vmatmul.mubr.f32.vlgmr.msra.gmra.mxu1 %v1343_v61 }
 0x25d   :  { %1014 = vmatprep.mubr.msk.f32.mxu1 %vm1243_vm1, %v1242_v3  ;;  %983 = vmatpush3.msra.mxu1 %v455_v46 }
 0x25e   :  { %984 = vmatprep.subr.mxu1 %v1242_v3 }
 0x25f   :  { %985 = vmatpush3.msra.mxu1 %v454_v47 }
 0x260   :  { %986 = vmatprep.subr.mxu1 %v1242_v3 }
 0x31c   :  { %v282_v2 = vpop.f32.mrf.mxu1 }
 0x31d   :  { %v283_v4 = vadd.f32 %v282_v2, %v215_v1  ;;  %v453_v1 = vld [vmem:[#allocation5 + $0x1a8] sm:$0xff]  ;;  %v450_v2 = vld [vmem:[#allocation5 + $0x190] sm:$0xff] }
 0x31e   :  { %v946_v5 = vpop.f32.mrf.mxu1  ;;  %987 = vmatpush3.msra.mxu1 %v453_v1  ;;  %v563_v1 = vld [vmem:[#allocation5 + $0x1c8] sm:$0xff] }
 0x31f   :  { %v286_v6 = vadd.f32 %v283_v4, %v1343_v61  ;;  %988 = vmatprep.subr.mxu1 %v1242_v3  ;;  %v449_v4 = vld [vmem:[#allocation5 + $0x188] sm:$0xff]  ;;  %v448_v5 = vld [vmem:[#allocation5 + $0x180] sm:$0xff] }
 0x320   :  { %989 = vmatpush3.msra.mxu1 %v452_v53  ;;  %v562_v53 = vld [vmem:[#allocation5 + $0x1c0] sm:$0xff] }
 0x321   :  { %v794_v7 = vmul.f32 -1.442695, %v286_v6  ;;  %990 = vmatprep.subr.mxu1 %v1242_v3 }
 0x323   :  { %1104 = vpow2.f32 %v794_v7  ;;  %v446_v7 = vld [vmem:[#allocation5 + $0x170] sm:$0xff] }
 0x330   :  { %v1105_v8 = vpop.eup %1104 }
 0x331   :  { %v290_v9 = vadd.f32 1.0, %v1105_v8  ;;  %v445_v8 = vld [vmem:[#allocation5 + $0x168] sm:$0xff] }
 0x333   :  { %1106 = vrcp.f32 %v290_v9  ;;  %v444_v9 = vld [vmem:[#allocation5 + $0x160] sm:$0xff] }
 0x340   :  { %v1107_v10 = vpop.eup %1106 }
 0x341   :  { %v293_v11 = vmul.f32 %v1107_v10, %v286_v6  ;;  %v447_v6 = vld [vmem:[#allocation5 + $0x178] sm:$0xff] }
 0x342   :  { %v443_v10 = vld [vmem:[#allocation5 + $0x158] sm:$0xff] }
 0x343   :  { %294 = vadd.xlane.f32.xlu1 %v293_v11  ;;  %v296_v12 = vmul.f32 %v293_v11, %v293_v11 }
 0x345   :  { %297 = vadd.xlane.f32.xlu0 %v296_v12  ;;  %v441_v12 = vld [vmem:[#allocation5 + $0x148] sm:$0xff] }
 0x3cc   :  { %v295_v30 = vpop.xlane.xlu1 %294 }
 0x3cd   :  { %v299_v31 = vmul.f32 0.03125, %v295_v30  ;;  %v437_v30 = vrot.slane %v1335_v54, %v436_v25 }
 0x3ce   :  { %v298_v32 = vpop.xlane.xlu0 %297 }
 0x3cf   :  { %v301_v33 = vmul.f32 %v299_v31, %v299_v31  ;;  %v300_v34 = vmul.f32 0.03125, %v298_v32  ;;  %v303_v39 = vsub.f32 %v293_v11, %v299_v31  ;;  %v442_v11 = vld [vmem:[#allocation5 + $0x150] sm:$0xff] }
 0x3d1   :  { %v302_v35 = vsub.f32 %v300_v34, %v301_v33  ;;  %v577_v33 = vld [vmem:[#allocation5 + $0x238] sm:$0xff]  ;;  %v576_v34 = vld [vmem:[#allocation5 + $0x230] sm:$0xff] }
 0x3d3   :  { %v304_v36 = vadd.f32 0.1, %v302_v35  ;;  %v459_v35 = vrot.slane %v1314_v20, %v314_v38  ;;  %v574_v38 = vld [vmem:[#allocation5 + $0x220] sm:$0xff] }
 0x3d5   :  { %1108 = vrsqrt.f32 %v304_v36 }
 0x3e2   :  { %v1109_v41 = vpop.eup %1108 }
 0x3e3   :  { %v306_v42 = vmul.f32 %v1109_v41, %v303_v39 }
 0x3e5   :  { %v311_v44 = vmul.f32 %v310_v40, %v306_v42 }
 0x3e7   :  { %v316_v45 = vadd.f32 %v315_v43, %v311_v44 }
 0x3e9   :  { %980 = vmatmul.mubr.f32.vlgmr.msra.gmra.mxu0 %v316_v45  ;;  %v1385_v50 = vadd.f32 %v316_v45, %v1343_v61  ;;  %v451_v61 = vld [vmem:[#allocation5 + $0x198] sm:$0xff] }
 0x3ea   :  { %1049 = vmatprep.mubr.msk.f32.mxu0 %vm1243_vm1, %v1242_v3  ;;  %991 = vmatpush3.msra.mxu1 %v451_v61 }
 0x3eb   :  { %992 = vmatprep.subr.mxu1 %v1242_v3  ;;  %1018 = vmatpush3.msra.mxu0 %v577_v33  ;;  %v693_v33 = vld [vmem:[#allocation8 + $0x50] sm:$0xff] }
 0x3ec   :  { %993 = vmatpush3.msra.mxu1 %v450_v2  ;;  %1019 = vmatprep.subr.mxu0 %v1242_v3 }
 0x3ed   :  { %994 = vmatprep.subr.mxu1 %v1242_v3  ;;  %1020 = vmatpush3.msra.mxu0 %v576_v34  ;;  %v692_v34 = vld [vmem:[#allocation8 + $0x48] sm:$0xff] }
 0x3ee   :  { %995 = vmatpush3.msra.mxu1 %v449_v4  ;;  %1021 = vmatprep.subr.mxu0 %v1242_v3 }
 0x3ef   :  { %996 = vmatprep.subr.mxu1 %v1242_v3 }
 0x3f0   :  { %997 = vmatpush3.msra.mxu1 %v448_v5 }
 0x3f1   :  { %998 = vmatprep.subr.mxu1 %v1242_v3 }
 0x3f2   :  { %999 = vmatpush3.msra.mxu1 %v447_v6 }
 0x3f3   :  { %1000 = vmatprep.subr.mxu1 %v1242_v3 }
 0x3f4   :  { %1001 = vmatpush3.msra.mxu1 %v446_v7 }
 0x3f5   :  { %1002 = vmatprep.subr.mxu1 %v1242_v3 }
 0x3f6   :  { %1003 = vmatpush3.msra.mxu1 %v445_v8 }
 0x3f7   :  { %1004 = vmatprep.subr.mxu1 %v1242_v3 }
 0x3f8   :  { %1005 = vmatpush3.msra.mxu1 %v444_v9  ;;  %v554_v9 = vrot.slane %v1335_v54, %v91_v19  ;;  %v581_v19 = vrot.slane %v1314_v20, %v436_v25  ;;  %v695_v20 = vld [vmem:[#allocation8 + $0x60] sm:$0xff]  ;;  %v694_v25 = vld [vmem:[#allocation8 + $0x58] sm:$0xff] }
 0x3f9   :  { %1006 = vmatprep.subr.mxu1 %v1242_v3 }
 0x3fa   :  { %1007 = vmatpush3.msra.mxu1 %v443_v10 }
 0x3fb   :  { %1008 = vmatprep.subr.mxu1 %v1242_v3 }
 0x3fc   :  { %1009 = vmatpush3.msra.mxu1 %v442_v11 }
 0x3fd   :  { %1010 = vmatprep.subr.mxu1 %v1242_v3 }
 0x3fe   :  { %1011 = vmatpush3.msra.mxu1 %v441_v12 }
 0x3ff   :  { %1012 = vmatprep.subr.mxu1 %v1242_v3 }
 0x400   :  { %1013 = vmatpush3.msra.mxu1 %v440_v13  ;;  %v559_v13 = vrot.slane %v1335_v54, %v188_v52 }
 0x401   :  { %1052 = vmatprep.subr.mxu1 %v1242_v3 }
 0x4a9   :  { %v404_v49 = vpop.f32.mrf.mxu0 }
 0x4aa   :  { %v405_v51 = vadd.f32 %v404_v49, %v337_v48  ;;  %v575_v49 = vld [vmem:[#allocation5 + $0x228] sm:$0xff] }
 0x4ab   :  { %v981_v55 = vpop.f32.mrf.mxu0  ;;  %1022 = vmatpush3.msra.mxu0 %v575_v49 }
 0x4ac   :  { %v408_v56 = vadd.f32 %v405_v51, %v1385_v50  ;;  %1023 = vmatprep.subr.mxu0 %v1242_v3  ;;  %v572_v51 = vld [vmem:[#allocation5 + $0x210] sm:$0xff]  ;;  %v571_v55 = vld [vmem:[#allocation5 + $0x208] sm:$0xff] }
 0x4ad   :  { %1024 = vmatpush3.msra.mxu0 %v574_v38 }
 0x4ae   :  { %v795_v57 = vmul.f32 -1.442695, %v408_v56  ;;  %1025 = vmatprep.subr.mxu0 %v1242_v3 }
 0x4b0   :  { %1110 = vpow2.f32 %v795_v57  ;;  %v569_v57 = vld [vmem:[#allocation5 + $0x1f8] sm:$0xff] }
 0x4bd   :  { %v1111_v58 = vpop.eup %1110 }
 0x4be   :  { %v412_v59 = vadd.f32 1.0, %v1111_v58  ;;  %v568_v58 = vld [vmem:[#allocation5 + $0x1f0] sm:$0xff] }
 0x4c0   :  { %1112 = vrcp.f32 %v412_v59  ;;  %v567_v59 = vld [vmem:[#allocation5 + $0x1e8] sm:$0xff] }
 0x4cd   :  { %v1113_v60 = vpop.eup %1112 }
 0x4ce   :  { %v415_v62 = vmul.f32 %v1113_v60, %v408_v56  ;;  %v570_v56 = vld [vmem:[#allocation5 + $0x200] sm:$0xff] }
 0x4cf   :  { %v566_v60 = vld [vmem:[#allocation5 + $0x1e0] sm:$0xff] }
 0x4d0   :  { %416 = vadd.xlane.f32.xlu1 %v415_v62  ;;  %v418_v63 = vmul.f32 %v415_v62, %v415_v62 }
 0x4d2   :  { %419 = vadd.xlane.f32.xlu0 %v418_v63  ;;  %v564_v63 = vld [vmem:[#allocation5 + $0x1d0] sm:$0xff] }
 0x559   :  { %v417_v14 = vpop.xlane.xlu1 %416 }
 0x55a   :  { %v421_v15 = vmul.f32 0.03125, %v417_v14 }
 0x55b   :  { %v420_v16 = vpop.xlane.xlu0 %419 }
 0x55c   :  { %v423_v17 = vmul.f32 %v421_v15, %v421_v15  ;;  %v422_v21 = vmul.f32 0.03125, %v420_v16  ;;  %v425_v26 = vsub.f32 %v415_v62, %v421_v15  ;;  %v565_v62 = vld [vmem:[#allocation5 + $0x1d8] sm:$0xff]  ;;  %v698_v16 = vld [vmem:[#allocation8 + $0x78] sm:$0xff] }
 0x55e   :  { %v424_v22 = vsub.f32 %v422_v21, %v423_v17  ;;  %v697_v17 = vld [vmem:[#allocation8 + $0x70] sm:$0xff] }
 0x560   :  { %v426_v23 = vadd.f32 0.1, %v424_v22 }
 0x562   :  { %1114 = vrsqrt.f32 %v426_v23 }
 0x56f   :  { %v1115_v28 = vpop.eup %1114 }
 0x570   :  { %v428_v29 = vmul.f32 %v1115_v28, %v425_v26 }
 0x572   :  { %v433_v31 = vmul.f32 %v432_v27, %v428_v29 }
 0x574   :  { %v438_v32 = vadd.f32 %v437_v30, %v433_v31 }
 0x576   :  { %1015 = vmatmul.mubr.f32.vlgmr.msra.gmra.mxu1 %v438_v32  ;;  %v1416_v39 = vadd.f32 %v438_v32, %v1385_v50  ;;  %v573_v50 = vld [vmem:[#allocation5 + $0x218] sm:$0xff] }
 0x577   :  { %1084 = vmatprep.mubr.msk.f32.mxu1 %vm1243_vm1, %v1242_v3  ;;  %1026 = vmatpush3.msra.mxu0 %v573_v50  ;;  %v696_v32 = vld [vmem:[#allocation8 + $0x68] sm:$0xff] }
 0x578   :  { %1027 = vmatprep.subr.mxu0 %v1242_v3  ;;  %1053 = vmatpush3.msra.mxu1 %v698_v16 }
 0x579   :  { %1028 = vmatpush3.msra.mxu0 %v572_v51  ;;  %1054 = vmatprep.subr.mxu1 %v1242_v3 }
 0x57a   :  { %1029 = vmatprep.subr.mxu0 %v1242_v3  ;;  %1055 = vmatpush3.msra.mxu1 %v697_v17 }
 0x57b   :  { %1030 = vmatpush3.msra.mxu0 %v571_v55  ;;  %1056 = vmatprep.subr.mxu1 %v1242_v3  ;;  %v676_v55 = vrot.slane %v1335_v54, %v214_v0 }
 0x57c   :  { %1031 = vmatprep.subr.mxu0 %v1242_v3  ;;  %1057 = vmatpush3.msra.mxu1 %v696_v32 }
 0x57d   :  { %1032 = vmatpush3.msra.mxu0 %v570_v56  ;;  %1058 = vmatprep.subr.mxu1 %v1242_v3 }
 0x57e   :  { %1033 = vmatprep.subr.mxu0 %v1242_v3  ;;  %1059 = vmatpush3.msra.mxu1 %v695_v20 }
 0x57f   :  { %1034 = vmatpush3.msra.mxu0 %v569_v57  ;;  %1060 = vmatprep.subr.mxu1 %v1242_v3 }
 0x580   :  { %1035 = vmatprep.subr.mxu0 %v1242_v3  ;;  %1061 = vmatpush3.msra.mxu1 %v694_v25 }
 0x581   :  { %1036 = vmatpush3.msra.mxu0 %v568_v58  ;;  %1062 = vmatprep.subr.mxu1 %v1242_v3 }
 0x582   :  { %1037 = vmatprep.subr.mxu0 %v1242_v3  ;;  %1063 = vmatpush3.msra.mxu1 %v693_v33 }
 0x583   :  { %1038 = vmatpush3.msra.mxu0 %v567_v59  ;;  %1064 = vmatprep.subr.mxu1 %v1242_v3 }
 0x584   :  { %1039 = vmatprep.subr.mxu0 %v1242_v3  ;;  %1065 = vmatpush3.msra.mxu1 %v692_v34 }
 0x585   :  { %1040 = vmatpush3.msra.mxu0 %v566_v60  ;;  %1066 = vmatprep.subr.mxu1 %v1242_v3 }
 0x586   :  { %1041 = vmatprep.subr.mxu0 %v1242_v3 }
 0x587   :  { %1042 = vmatpush3.msra.mxu0 %v565_v62  ;;  %v798_v62 = vld [vmem:[#allocation8 + $0x80] ss:$0 sm:$0xff] }
 0x588   :  { %1043 = vmatprep.subr.mxu0 %v1242_v3 }
 0x589   :  { %1044 = vmatpush3.msra.mxu0 %v564_v63 }
 0x58a   :  { %1045 = vmatprep.subr.mxu0 %v1242_v3 }
 0x58b   :  { %1046 = vmatpush3.msra.mxu0 %v563_v1 }
 0x58c   :  { %1047 = vmatprep.subr.mxu0 %v1242_v3 }
 0x58d   :  { %1048 = vmatpush3.msra.mxu0 %v562_v53 }
 0x636   :  { %v526_v36 = vpop.f32.mrf.mxu1 }
 0x637   :  { %v527_v40 = vadd.f32 %v526_v36, %v459_v35  ;;  %v691_v35 = vld [vmem:[#allocation8 + $0x40] sm:$0xff]  ;;  %v690_v36 = vld [vmem:[#allocation8 + $0x38] sm:$0xff] }
 0x638   :  { %v1016_v41 = vpop.f32.mrf.mxu1  ;;  %1067 = vmatpush3.msra.mxu1 %v691_v35 }
 0x639   :  { %v530_v42 = vadd.f32 %v527_v40, %v1416_v39  ;;  %1068 = vmatprep.subr.mxu1 %v1242_v3  ;;  %v688_v40 = vld [vmem:[#allocation8 + $0x28] sm:$0xff]  ;;  %v687_v41 = vld [vmem:[#allocation8 + $0x20] sm:$0xff] }
 0x63a   :  { %1069 = vmatpush3.msra.mxu1 %v690_v36 }
 0x63b   :  { %v796_v43 = vmul.f32 -1.442695, %v530_v42  ;;  %1070 = vmatprep.subr.mxu1 %v1242_v3 }
 0x63d   :  { %1116 = vpow2.f32 %v796_v43  ;;  %v685_v43 = vld [vmem:[#allocation8 + $0x10] sm:$0xff] }
 0x64a   :  { %v1117_v44 = vpop.eup %1116 }
 0x64b   :  { %v534_v45 = vadd.f32 1.0, %v1117_v44  ;;  %v684_v44 = vld [vmem:[#allocation8 + $0x8] sm:$0xff] }
 0x64d   :  { %1118 = vrcp.f32 %v534_v45  ;;  %v683_v45 = vld [vmem:[#allocation8] sm:$0xff] }
 0x65a   :  { %v1119_v46 = vpop.eup %1118 }
 0x65b   :  { %v537_v47 = vmul.f32 %v1119_v46, %v530_v42  ;;  %v686_v42 = vld [vmem:[#allocation8 + $0x18] sm:$0xff] }
 0x65d   :  { %538 = vadd.xlane.f32.xlu1 %v537_v47  ;;  %v540_v48 = vmul.f32 %v537_v47, %v537_v47 }
 0x65f   :  { %541 = vadd.xlane.f32.xlu0 %v540_v48 }
 0x6e6   :  { %v539_v61 = vpop.xlane.xlu1 %538 }
 0x6e7   :  { %v543_v2 = vmul.f32 0.03125, %v539_v61 }
 0x6e8   :  { %v542_v4 = vpop.xlane.xlu0 %541 }
 0x6e9   :  { %v545_v5 = vmul.f32 %v543_v2, %v543_v2  ;;  %v544_v6 = vmul.f32 0.03125, %v542_v4  ;;  %v547_v10 = vsub.f32 %v537_v47, %v543_v2 }
 0x6eb   :  { %v546_v7 = vsub.f32 %v544_v6, %v545_v5 }
 0x6ed   :  { %v548_v8 = vadd.f32 0.1, %v546_v7 }
 0x6ef   :  { %1120 = vrsqrt.f32 %v548_v8 }
 0x6fc   :  { %v1121_v11 = vpop.eup %1120 }
 0x6fd   :  { %v550_v12 = vmul.f32 %v1121_v11, %v547_v10 }
 0x6ff   :  { %v555_v14 = vmul.f32 %v554_v9, %v550_v12 }
 0x701   :  { %v560_v15 = vadd.f32 %v559_v13, %v555_v14 }
 0x703   :  { %1050 = vmatmul.mubr.f32.vlgmr.msra.gmra.mxu0 %v560_v15  ;;  %v561_v22 = vadd.f32 %v560_v15, %v1416_v39  ;;  %v689_v39 = vld [vmem:[#allocation8 + $0x30] sm:$0xff] }
 0x704   :  { %1071 = vmatpush3.msra.mxu1 %v689_v39 }
 0x705   :  { %1072 = vmatprep.subr.mxu1 %v1242_v3 }
 0x706   :  { %1073 = vmatpush3.msra.mxu1 %v688_v40 }
 0x707   :  { %1074 = vmatprep.subr.mxu1 %v1242_v3 }
 0x708   :  { %1075 = vmatpush3.msra.mxu1 %v687_v41 }
 0x709   :  { %1076 = vmatprep.subr.mxu1 %v1242_v3 }
 0x70a   :  { %1077 = vmatpush3.msra.mxu1 %v686_v42 }
 0x70b   :  { %1078 = vmatprep.subr.mxu1 %v1242_v3 }
 0x70c   :  { %1079 = vmatpush3.msra.mxu1 %v685_v43 }
 0x70d   :  { %1080 = vmatprep.subr.mxu1 %v1242_v3 }
 0x70e   :  { %1081 = vmatpush3.msra.mxu1 %v684_v44 }
 0x70f   :  { %1082 = vmatprep.subr.mxu1 %v1242_v3  ;;  %v681_v3 = vrot.slane %v1335_v54, %v309_v37 }
 0x710   :  { %1083 = vmatpush3.msra.mxu1 %v683_v45 }
 0x7c3   :  { %v648_v21 = vpop.f32.mrf.mxu0 }
 0x7c4   :  { %v649_v23 = vadd.f32 %v648_v21, %v581_v19 }
 0x7c5   :  { %v1051_v52 = vpop.f32.mrf.mxu0 }
 0x7c6   :  { %v652_v24 = vadd.f32 %v649_v23, %v561_v22 }
 0x7c8   :  { %v797_v26 = vmul.f32 -1.442695, %v652_v24 }
 0x7ca   :  { %1122 = vpow2.f32 %v797_v26 }
 0x7d7   :  { %v1123_v27 = vpop.eup %1122 }
 0x7d8   :  { %v656_v28 = vadd.f32 1.0, %v1123_v27 }
 0x7da   :  { %1124 = vrcp.f32 %v656_v28 }
 0x7e7   :  { %v1125_v29 = vpop.eup %1124 }
 0x7e8   :  { %v659_v30 = vmul.f32 %v1125_v29, %v652_v24 }
 0x7ea   :  { %660 = vadd.xlane.f32.xlu1 %v659_v30  ;;  %v662_v31 = vmul.f32 %v659_v30, %v659_v30 }
 0x7ec   :  { %663 = vadd.xlane.f32.xlu0 %v662_v31 }
 0x873   :  { %v661_v46 = vpop.xlane.xlu1 %660 }
 0x874   :  { %v665_v47 = vmul.f32 0.03125, %v661_v46 }
 0x875   :  { %v664_v48 = vpop.xlane.xlu0 %663 }
 0x876   :  { %v667_v49 = vmul.f32 %v665_v47, %v665_v47  ;;  %v666_v38 = vmul.f32 0.03125, %v664_v48  ;;  %v669_v56 = vsub.f32 %v659_v30, %v665_v47 }
 0x878   :  { %v668_v50 = vsub.f32 %v666_v38, %v667_v49 }
 0x87a   :  { %v670_v51 = vadd.f32 0.1, %v668_v50 }
 0x87c   :  { %1126 = vrsqrt.f32 %v670_v51 }
 0x889   :  { %v1127_v57 = vpop.eup %1126 }
 0x88a   :  { %v672_v58 = vmul.f32 %v1127_v57, %v669_v56 }
 0x88c   :  { %v677_v59 = vmul.f32 %v676_v55, %v672_v58 }
 0x88e   :  { %v682_v60 = vadd.f32 %v681_v3, %v677_v59 }
 0x890   :  { %1085 = vmatmul.mubr.f32.vlgmr.msra.gmra.mxu1 %v682_v60 }
 0x950   :  { %v770_v63 = vpop.f32.mrf.mxu1 }
 0x951   :  { %v771_v1 = vadd.f32 %v798_v62, %v770_v63 }
 0x952   :  { %v1086_v53 = vpop.f32.mrf.mxu1 }
 0x953   :  { %774 = vst [vmem:[#allocation10] sm:$0xff] %v771_v1 }
 0x954   :  { %1219 = shalt.err (!%p1216_p10)
}
 0x955   :  { %784 = dma.vmem_to_hbm [thread:$0]  %s782_s3, 128, %s1470_s4, [#allocation4]  }
 0x956   :  { %1234 = dma.done.wait [#allocation4], 128  }
 0x957   :  { %1235 = vsyncadd [#allocation4], 4294967168 }
 0x958   :  { %788 = vsyncpa [#allocation3], 1 }
 0x959   :  { %789 = vsyncpa [#allocation6], 1 }
 0x95a   :  { %790 = vsyncpa [#allocation9], 1 }
 0x95b   :  { %791 = vsyncpa [#allocation4], 1 }

</bundles_post_ra>
